<compile_context>
chip_gen: v5e
topology: v5e:2x2
jax: 0.10.0
libtpu: 0.0.40
codegen_flags: <defaults>
</compile_context>

<pallas_src>
import jax
import jax.numpy as jnp
from jax import lax
from jax.experimental import pallas as pl
from jax.experimental.pallas import tpu as pltpu


def residual_kernel(xs_ref, w1_ref, b1_ref, w2_ref, b2_ref, o_ref):
    # xs_ref: (3, bb, H+2, W, C_in)  dx-shifted, zero-padded input, f32
    # w1_ref: (3, 3, C_in, C_res)    3x3 conv weight (HWIO), bf16
    # b1_ref: (1, C_res)  f32
    # w2_ref: (C_res, C_in)          1x1 conv weight, bf16
    # b2_ref: (1, C_in)   f32
    # o_ref : (bb, H, W, C_in)
    bb, H, W, C_in = o_ref.shape
    C_res = w1_ref.shape[3]
    Hp = H + 2
    R = bb * Hp                 # total padded rows in this block
    M = (R - 2) * W             # conv-output rows computed (pad rows discarded)

    w1 = w1_ref[...]            # (3, 3, C_in, C_res) bf16, loaded once

    acc = jnp.zeros((M, C_res), dtype=jnp.float32)
    x_res = None
    for dx in range(3):
        raw = xs_ref[dx]                                   # (bb, Hp, W, C_in) f32
        if dx == 1:
            x_res = raw                                    # interior rows == original x
        # ReLU(x); zero padding stays zero, so ReLU-then-pad == pad-then-ReLU.
        s = jnp.maximum(raw, 0.0)
        sf = s.reshape(R * W, C_in).astype(jnp.bfloat16)   # layout no-op when W % 8 == 0
        for dy in range(3):
            # dy*W is a multiple of 8 when W % 8 == 0 -> tile-aligned slice.
            acc += jnp.dot(sf[dy * W: dy * W + M, :], w1[dy, dx],
                           preferred_element_type=jnp.float32)

    h = jnp.maximum(acc + b1_ref[0][None, :], 0.0)         # (M, C_res) f32
    res = jnp.dot(h.astype(jnp.bfloat16), w2_ref[...],
                  preferred_element_type=jnp.float32)
    res = res + b2_ref[0][None, :]                         # (M, C_in) f32

    for i in range(bb):
        xi = x_res[i, 1:H + 1, :, :]                       # (H, W, C_in) original x, f32
        ri = res[i * Hp * W: i * Hp * W + H * W, :].reshape(H, W, C_in)
        o_ref[i] = (xi + ri).astype(o_ref.dtype)


@jax.jit
def residual_layer(x, w1, b1, w2, b2):
    """x: (B, H, W, C_in) NHWC. Returns x + res_block(x)."""
    B, H, W, C_in = x.shape
    C_res = w1.shape[3]

    # Batch block: raise the matmul M dimension to ~256 rows where possible,
    # keep per-step VMEM bounded, and divide B evenly.
    rows_per_img = (H + 2) * W
    bb = max(1, min(B, -(-256 // rows_per_img)))
    slab_bytes = 3 * rows_per_img * C_in * x.dtype.itemsize        # all 3 dx slabs / image
    max_bb = max(1, (8 * 2**20) // max(1, slab_bytes))
    bb = min(bb, max_bb)
    while B % bb:
        bb -= 1

    # dx-shifted, zero-padded slabs: xs[d, b, r, w, c] = xpad[b, r, w + d]
    xpad = jnp.pad(x, ((0, 0), (1, 1), (1, 1), (0, 0)))
    xs = jnp.stack([xpad[:, :, d:d + W, :] for d in range(3)], axis=0)  # (3,B,H+2,W,C)

    w1b = w1.astype(jnp.bfloat16)
    w2b = w2.astype(jnp.bfloat16)
    b1f = b1.astype(jnp.float32)
    b2f = b2.astype(jnp.float32)

    block_in = 3 * bb * (H + 2) * W * C_in * x.dtype.itemsize
    block_out = bb * H * W * C_in * x.dtype.itemsize
    vmem_limit = int(min(max(4 * (block_in + block_out), 32 * 2**20), 60 * 2**20))

    return pl.pallas_call(
        residual_kernel,
        out_shape=jax.ShapeDtypeStruct((B, H, W, C_in), x.dtype),
        grid_spec=pltpu.PrefetchScalarGridSpec(
            num_scalar_prefetch=0,
            grid=(B // bb,),
            in_specs=[
                pl.BlockSpec((3, bb, H + 2, W, C_in), lambda b: (0, b, 0, 0, 0)),
                pl.BlockSpec((3, 3, C_in, C_res), lambda b: (0, 0, 0, 0)),
                pl.BlockSpec((1, C_res), lambda b: (0, 0)),
                pl.BlockSpec((C_res, C_in), lambda b: (0, 0)),
                pl.BlockSpec((1, C_in), lambda b: (0, 0)),
            ],
            out_specs=pl.BlockSpec((bb, H, W, C_in), lambda b: (b, 0, 0, 0)),
        ),
        compiler_params=pltpu.CompilerParams(
            dimension_semantics=("parallel",),
            vmem_limit_bytes=vmem_limit),
    )(xs, w1b, b1f, w2b, b2f)


def reference_f32(x, w1, b1, w2, b2):
    """Pure-f32 JAX reference of the PyTorch forward (NHWC / HWIO)."""
    h = jnp.maximum(x, 0.0)
    h = lax.conv_general_dilated(
        h, w1, window_strides=(1, 1), padding=((1, 1), (1, 1)),
        dimension_numbers=("NHWC", "HWIO", "NHWC"))
    h = jnp.maximum(h + b1.reshape(1, 1, 1, -1), 0.0)
    h = jnp.einsum("bhwc,cd->bhwd", h, w2) + b2.reshape(1, 1, 1, -1)
    return x + h


def reference_mixed(x, w1, b1, w2, b2):
    """Same op with bf16 matmul operands / f32 accumulation (matches kernel)."""
    h = jnp.maximum(x, 0.0).astype(jnp.bfloat16)
    h = lax.conv_general_dilated(
        h, w1.astype(jnp.bfloat16), window_strides=(1, 1),
        padding=((1, 1), (1, 1)),
        dimension_numbers=("NHWC", "HWIO", "NHWC"),
        preferred_element_type=jnp.float32)
    h = jnp.maximum(h + b1.reshape(1, 1, 1, -1), 0.0)
    h = jnp.einsum("bhwc,cd->bhwd", h.astype(jnp.bfloat16),
                   w2.astype(jnp.bfloat16),
                   preferred_element_type=jnp.float32)
    return x + h + b2.reshape(1, 1, 1, -1)


if __name__ == "__main__":
    # Module defaults: input_channels=128, res_output_channels=32.
    B, H, W = 2, 8, 8
    C_in, C_res = 128, 32

    key = jax.random.PRNGKey(0)
    kx, k1, kb1, k2, kb2 = jax.random.split(key, 5)

    x = jax.random.normal(kx, (B, H, W, C_in), dtype=jnp.float32)

    # Deterministic Kaiming-uniform-style init (as in nn.Conv2d defaults).
    fan1 = C_in * 3 * 3
    bound1 = 1.0 / jnp.sqrt(fan1)
    w1 = jax.random.uniform(k1, (3, 3, C_in, C_res), jnp.float32,
                            -bound1, bound1)
    b1 = jax.random.uniform(kb1, (1, C_res), jnp.float32, -bound1, bound1)

    fan2 = C_res * 1 * 1
    bound2 = 1.0 / jnp.sqrt(fan2)
    w2 = jax.random.uniform(k2, (C_res, C_in), jnp.float32, -bound2, bound2)
    b2 = jax.random.uniform(kb2, (1, C_in), jnp.float32, -bound2, bound2)

    out = residual_layer(x, w1, b1, w2, b2)
    out = jax.block_until_ready(out)

    ref_mixed = reference_mixed(x, w1, b1, w2, b2)
    ref_f32 = reference_f32(x, w1, b1, w2, b2)
    assert out.shape == (B, H, W, C_in)
    # Tight check vs a reference using the same bf16-operand / f32-accum math.
    assert jnp.allclose(out, ref_mixed, atol=1e-3, rtol=1e-3), (
        float(jnp.max(jnp.abs(out - ref_mixed))))
    # Loose sanity check vs the pure-f32 reference (bf16 operand rounding).
    assert jnp.allclose(out, ref_f32, atol=3e-2, rtol=3e-2), (
        float(jnp.max(jnp.abs(out - ref_f32))))

    print("KERNEL_OK")
</pallas_src>

<mosaic_0001>
module attributes {stable_mosaic.version = 11 : i64} {
  func.func @residual_kernel(%arg0: i32, %arg1: memref<3x2x10x8x128xf32, #tpu.memory_space<vmem>>, %arg2: memref<3x3x128x32xbf16, #tpu.memory_space<vmem>>, %arg3: memref<1x32xf32, #tpu.memory_space<vmem>>, %arg4: memref<32x128xbf16, #tpu.memory_space<vmem>>, %arg5: memref<1x128xf32, #tpu.memory_space<vmem>>, %arg6: memref<2x8x8x128xf32, #tpu.memory_space<vmem>>) attributes {dimension_semantics = [#tpu.dimension_semantics<parallel>], iteration_bounds = array<i64: 1>, scalar_prefetch = 0 : i64, scratch_operands = 0 : i64, tpu.core_type = #tpu.core_type<tc>, window_params = [{transform_indices = @transform_0, window_bounds = array<i64: 3, 2, 10, 8, 128>}, {pipeline_mode = #tpu.pipeline_mode<synchronous>, transform_indices = @transform_1, window_bounds = array<i64: 3, 3, 128, 32>}, {pipeline_mode = #tpu.pipeline_mode<synchronous>, transform_indices = @transform_2, window_bounds = array<i64: 1, 32>}, {pipeline_mode = #tpu.pipeline_mode<synchronous>, transform_indices = @transform_3, window_bounds = array<i64: 32, 128>}, {pipeline_mode = #tpu.pipeline_mode<synchronous>, transform_indices = @transform_4, window_bounds = array<i64: 1, 128>}, {transform_indices = @transform_5, window_bounds = array<i64: 2, 8, 8, 128>}]} {
    %c0 = arith.constant 0 : index
    %c0_0 = arith.constant 0 : index
    %c0_1 = arith.constant 0 : index
    %c0_2 = arith.constant 0 : index
    %0 = vector.load %arg2[%c0, %c0_0, %c0_1, %c0_2] : memref<3x3x128x32xbf16, #tpu.memory_space<vmem>>, vector<3x3x128x32xbf16>
    %cst = arith.constant 0.000000e+00 : f32
    %1 = vector.broadcast %cst : f32 to vector<144x32xf32>
    %c0_3 = arith.constant 0 : index
    %c0_4 = arith.constant 0 : index
    %c0_5 = arith.constant 0 : index
    %c0_6 = arith.constant 0 : index
    %c0_7 = arith.constant 0 : index
    %2 = vector.load %arg1[%c0_3, %c0_4, %c0_5, %c0_6, %c0_7] : memref<3x2x10x8x128xf32, #tpu.memory_space<vmem>>, vector<1x2x10x8x128xf32>
    %3 = vector.shape_cast %2 : vector<1x2x10x8x128xf32> to vector<2x10x8x128xf32>
    %cst_8 = arith.constant 0.000000e+00 : f32
    %4 = vector.broadcast %cst_8 : f32 to vector<2x10x8x128xf32>
    %5 = arith.maximumf %3, %4 : vector<2x10x8x128xf32>
    %6 = vector.shape_cast %5 : vector<2x10x8x128xf32> to vector<160x128xf32>
    %7 = arith.truncf %6 : vector<160x128xf32> to vector<160x128xbf16>
    %8 = vector.extract_strided_slice %7 {offsets = [0, 0], sizes = [144, 128], strides = [1, 1]} : vector<160x128xbf16> to vector<144x128xbf16>
    %9 = vector.extract_strided_slice %0 {offsets = [0, 0, 0, 0], sizes = [1, 1, 128, 32], strides = [1, 1, 1, 1]} : vector<3x3x128x32xbf16> to vector<1x1x128x32xbf16>
    %10 = vector.shape_cast %9 : vector<1x1x128x32xbf16> to vector<128x32xbf16>
    %cst_9 = arith.constant dense<0.000000e+00> : vector<144x32xf32>
    %11 = tpu.matmul %8, %10, %cst_9 {dimension_numbers = #tpu.dot_dimension_numbers<[1], [0], [0], [1], [0, 0, 1, 1], [], []>} : vector<144x128xbf16>, vector<128x32xbf16>, vector<144x32xf32> -> vector<144x32xf32>
    %12 = arith.addf %1, %11 : vector<144x32xf32>
    %13 = vector.extract_strided_slice %7 {offsets = [8, 0], sizes = [144, 128], strides = [1, 1]} : vector<160x128xbf16> to vector<144x128xbf16>
    %14 = vector.extract_strided_slice %0 {offsets = [1, 0, 0, 0], sizes = [1, 1, 128, 32], strides = [1, 1, 1, 1]} : vector<3x3x128x32xbf16> to vector<1x1x128x32xbf16>
    %15 = vector.shape_cast %14 : vector<1x1x128x32xbf16> to vector<128x32xbf16>
    %cst_10 = arith.constant dense<0.000000e+00> : vector<144x32xf32>
    %16 = tpu.matmul %13, %15, %cst_10 {dimension_numbers = #tpu.dot_dimension_numbers<[1], [0], [0], [1], [0, 0, 1, 1], [], []>} : vector<144x128xbf16>, vector<128x32xbf16>, vector<144x32xf32> -> vector<144x32xf32>
    %17 = arith.addf %12, %16 : vector<144x32xf32>
    %18 = vector.extract_strided_slice %7 {offsets = [16, 0], sizes = [144, 128], strides = [1, 1]} : vector<160x128xbf16> to vector<144x128xbf16>
    %19 = vector.extract_strided_slice %0 {offsets = [2, 0, 0, 0], sizes = [1, 1, 128, 32], strides = [1, 1, 1, 1]} : vector<3x3x128x32xbf16> to vector<1x1x128x32xbf16>
    %20 = vector.shape_cast %19 : vector<1x1x128x32xbf16> to vector<128x32xbf16>
    %cst_11 = arith.constant dense<0.000000e+00> : vector<144x32xf32>
    %21 = tpu.matmul %18, %20, %cst_11 {dimension_numbers = #tpu.dot_dimension_numbers<[1], [0], [0], [1], [0, 0, 1, 1], [], []>} : vector<144x128xbf16>, vector<128x32xbf16>, vector<144x32xf32> -> vector<144x32xf32>
    %22 = arith.addf %17, %21 : vector<144x32xf32>
    %c1 = arith.constant 1 : index
    %c0_12 = arith.constant 0 : index
    %c0_13 = arith.constant 0 : index
    %c0_14 = arith.constant 0 : index
    %c0_15 = arith.constant 0 : index
    %23 = vector.load %arg1[%c1, %c0_12, %c0_13, %c0_14, %c0_15] : memref<3x2x10x8x128xf32, #tpu.memory_space<vmem>>, vector<1x2x10x8x128xf32>
    %24 = vector.shape_cast %23 : vector<1x2x10x8x128xf32> to vector<2x10x8x128xf32>
    %cst_16 = arith.constant 0.000000e+00 : f32
    %25 = vector.broadcast %cst_16 : f32 to vector<2x10x8x128xf32>
    %26 = arith.maximumf %24, %25 : vector<2x10x8x128xf32>
    %27 = vector.shape_cast %26 : vector<2x10x8x128xf32> to vector<160x128xf32>
    %28 = arith.truncf %27 : vector<160x128xf32> to vector<160x128xbf16>
    %29 = vector.extract_strided_slice %28 {offsets = [0, 0], sizes = [144, 128], strides = [1, 1]} : vector<160x128xbf16> to vector<144x128xbf16>
    %30 = vector.extract_strided_slice %0 {offsets = [0, 1, 0, 0], sizes = [1, 1, 128, 32], strides = [1, 1, 1, 1]} : vector<3x3x128x32xbf16> to vector<1x1x128x32xbf16>
    %31 = vector.shape_cast %30 : vector<1x1x128x32xbf16> to vector<128x32xbf16>
    %cst_17 = arith.constant dense<0.000000e+00> : vector<144x32xf32>
    %32 = tpu.matmul %29, %31, %cst_17 {dimension_numbers = #tpu.dot_dimension_numbers<[1], [0], [0], [1], [0, 0, 1, 1], [], []>} : vector<144x128xbf16>, vector<128x32xbf16>, vector<144x32xf32> -> vector<144x32xf32>
    %33 = arith.addf %22, %32 : vector<144x32xf32>
    %34 = vector.extract_strided_slice %28 {offsets = [8, 0], sizes = [144, 128], strides = [1, 1]} : vector<160x128xbf16> to vector<144x128xbf16>
    %35 = vector.extract_strided_slice %0 {offsets = [1, 1, 0, 0], sizes = [1, 1, 128, 32], strides = [1, 1, 1, 1]} : vector<3x3x128x32xbf16> to vector<1x1x128x32xbf16>
    %36 = vector.shape_cast %35 : vector<1x1x128x32xbf16> to vector<128x32xbf16>
    %cst_18 = arith.constant dense<0.000000e+00> : vector<144x32xf32>
    %37 = tpu.matmul %34, %36, %cst_18 {dimension_numbers = #tpu.dot_dimension_numbers<[1], [0], [0], [1], [0, 0, 1, 1], [], []>} : vector<144x128xbf16>, vector<128x32xbf16>, vector<144x32xf32> -> vector<144x32xf32>
    %38 = arith.addf %33, %37 : vector<144x32xf32>
    %39 = vector.extract_strided_slice %28 {offsets = [16, 0], sizes = [144, 128], strides = [1, 1]} : vector<160x128xbf16> to vector<144x128xbf16>
    %40 = vector.extract_strided_slice %0 {offsets = [2, 1, 0, 0], sizes = [1, 1, 128, 32], strides = [1, 1, 1, 1]} : vector<3x3x128x32xbf16> to vector<1x1x128x32xbf16>
    %41 = vector.shape_cast %40 : vector<1x1x128x32xbf16> to vector<128x32xbf16>
    %cst_19 = arith.constant dense<0.000000e+00> : vector<144x32xf32>
    %42 = tpu.matmul %39, %41, %cst_19 {dimension_numbers = #tpu.dot_dimension_numbers<[1], [0], [0], [1], [0, 0, 1, 1], [], []>} : vector<144x128xbf16>, vector<128x32xbf16>, vector<144x32xf32> -> vector<144x32xf32>
    %43 = arith.addf %38, %42 : vector<144x32xf32>
    %c2 = arith.constant 2 : index
    %c0_20 = arith.constant 0 : index
    %c0_21 = arith.constant 0 : index
    %c0_22 = arith.constant 0 : index
    %c0_23 = arith.constant 0 : index
    %44 = vector.load %arg1[%c2, %c0_20, %c0_21, %c0_22, %c0_23] : memref<3x2x10x8x128xf32, #tpu.memory_space<vmem>>, vector<1x2x10x8x128xf32>
    %45 = vector.shape_cast %44 : vector<1x2x10x8x128xf32> to vector<2x10x8x128xf32>
    %cst_24 = arith.constant 0.000000e+00 : f32
    %46 = vector.broadcast %cst_24 : f32 to vector<2x10x8x128xf32>
    %47 = arith.maximumf %45, %46 : vector<2x10x8x128xf32>
    %48 = vector.shape_cast %47 : vector<2x10x8x128xf32> to vector<160x128xf32>
    %49 = arith.truncf %48 : vector<160x128xf32> to vector<160x128xbf16>
    %50 = vector.extract_strided_slice %49 {offsets = [0, 0], sizes = [144, 128], strides = [1, 1]} : vector<160x128xbf16> to vector<144x128xbf16>
    %51 = vector.extract_strided_slice %0 {offsets = [0, 2, 0, 0], sizes = [1, 1, 128, 32], strides = [1, 1, 1, 1]} : vector<3x3x128x32xbf16> to vector<1x1x128x32xbf16>
    %52 = vector.shape_cast %51 : vector<1x1x128x32xbf16> to vector<128x32xbf16>
    %cst_25 = arith.constant dense<0.000000e+00> : vector<144x32xf32>
    %53 = tpu.matmul %50, %52, %cst_25 {dimension_numbers = #tpu.dot_dimension_numbers<[1], [0], [0], [1], [0, 0, 1, 1], [], []>} : vector<144x128xbf16>, vector<128x32xbf16>, vector<144x32xf32> -> vector<144x32xf32>
    %54 = arith.addf %43, %53 : vector<144x32xf32>
    %55 = vector.extract_strided_slice %49 {offsets = [8, 0], sizes = [144, 128], strides = [1, 1]} : vector<160x128xbf16> to vector<144x128xbf16>
    %56 = vector.extract_strided_slice %0 {offsets = [1, 2, 0, 0], sizes = [1, 1, 128, 32], strides = [1, 1, 1, 1]} : vector<3x3x128x32xbf16> to vector<1x1x128x32xbf16>
    %57 = vector.shape_cast %56 : vector<1x1x128x32xbf16> to vector<128x32xbf16>
    %cst_26 = arith.constant dense<0.000000e+00> : vector<144x32xf32>
    %58 = tpu.matmul %55, %57, %cst_26 {dimension_numbers = #tpu.dot_dimension_numbers<[1], [0], [0], [1], [0, 0, 1, 1], [], []>} : vector<144x128xbf16>, vector<128x32xbf16>, vector<144x32xf32> -> vector<144x32xf32>
    %59 = arith.addf %54, %58 : vector<144x32xf32>
    %60 = vector.extract_strided_slice %49 {offsets = [16, 0], sizes = [144, 128], strides = [1, 1]} : vector<160x128xbf16> to vector<144x128xbf16>
    %61 = vector.extract_strided_slice %0 {offsets = [2, 2, 0, 0], sizes = [1, 1, 128, 32], strides = [1, 1, 1, 1]} : vector<3x3x128x32xbf16> to vector<1x1x128x32xbf16>
    %62 = vector.shape_cast %61 : vector<1x1x128x32xbf16> to vector<128x32xbf16>
    %cst_27 = arith.constant dense<0.000000e+00> : vector<144x32xf32>
    %63 = tpu.matmul %60, %62, %cst_27 {dimension_numbers = #tpu.dot_dimension_numbers<[1], [0], [0], [1], [0, 0, 1, 1], [], []>} : vector<144x128xbf16>, vector<128x32xbf16>, vector<144x32xf32> -> vector<144x32xf32>
    %64 = arith.addf %59, %63 : vector<144x32xf32>
    %c0_28 = arith.constant 0 : index
    %c0_29 = arith.constant 0 : index
    %65 = vector.load %arg3[%c0_28, %c0_29] : memref<1x32xf32, #tpu.memory_space<vmem>>, vector<1x32xf32>
    %66 = vector.shape_cast %65 : vector<1x32xf32> to vector<32xf32>
    %67 = vector.shape_cast %66 : vector<32xf32> to vector<1x32xf32>
    %68 = vector.broadcast %67 : vector<1x32xf32> to vector<144x32xf32>
    %69 = arith.addf %64, %68 : vector<144x32xf32>
    %cst_30 = arith.constant 0.000000e+00 : f32
    %70 = vector.broadcast %cst_30 : f32 to vector<144x32xf32>
    %71 = arith.maximumf %69, %70 : vector<144x32xf32>
    %72 = arith.truncf %71 : vector<144x32xf32> to vector<144x32xbf16>
    %c0_31 = arith.constant 0 : index
    %c0_32 = arith.constant 0 : index
    %73 = vector.load %arg4[%c0_31, %c0_32] : memref<32x128xbf16, #tpu.memory_space<vmem>>, vector<32x128xbf16>
    %cst_33 = arith.constant dense<0.000000e+00> : vector<144x128xf32>
    %74 = tpu.matmul %72, %73, %cst_33 {dimension_numbers = #tpu.dot_dimension_numbers<[1], [0], [0], [1], [0, 0, 1, 1], [], []>} : vector<144x32xbf16>, vector<32x128xbf16>, vector<144x128xf32> -> vector<144x128xf32>
    %c0_34 = arith.constant 0 : index
    %c0_35 = arith.constant 0 : index
    %75 = vector.load %arg5[%c0_34, %c0_35] : memref<1x128xf32, #tpu.memory_space<vmem>>, vector<1x128xf32>
    %76 = vector.shape_cast %75 : vector<1x128xf32> to vector<128xf32>
    %77 = vector.shape_cast %76 : vector<128xf32> to vector<1x128xf32>
    %78 = vector.broadcast %77 : vector<1x128xf32> to vector<144x128xf32>
    %79 = arith.addf %74, %78 : vector<144x128xf32>
    %80 = vector.extract_strided_slice %24 {offsets = [0, 1, 0, 0], sizes = [1, 8, 8, 128], strides = [1, 1, 1, 1]} : vector<2x10x8x128xf32> to vector<1x8x8x128xf32>
    %81 = vector.shape_cast %80 : vector<1x8x8x128xf32> to vector<8x8x128xf32>
    %82 = vector.extract_strided_slice %79 {offsets = [0, 0], sizes = [64, 128], strides = [1, 1]} : vector<144x128xf32> to vector<64x128xf32>
    %83 = vector.shape_cast %82 : vector<64x128xf32> to vector<8x8x128xf32>
    %84 = arith.addf %81, %83 : vector<8x8x128xf32>
    %c0_36 = arith.constant 0 : index
    %c0_37 = arith.constant 0 : index
    %c0_38 = arith.constant 0 : index
    %c0_39 = arith.constant 0 : index
    %85 = vector.load %arg6[%c0_36, %c0_37, %c0_38, %c0_39] : memref<2x8x8x128xf32, #tpu.memory_space<vmem>>, vector<1x8x8x128xf32>
    %86 = vector.shape_cast %85 : vector<1x8x8x128xf32> to vector<8x8x128xf32>
    %87 = vector.shape_cast %84 : vector<8x8x128xf32> to vector<1x8x8x128xf32>
    tpu.vector_store %arg6[%c0_36, %c0_37, %c0_38, %c0_39], %87 {strides = array<i32>} : memref<2x8x8x128xf32, #tpu.memory_space<vmem>>, vector<1x8x8x128xf32>,
    %88 = vector.extract_strided_slice %24 {offsets = [1, 1, 0, 0], sizes = [1, 8, 8, 128], strides = [1, 1, 1, 1]} : vector<2x10x8x128xf32> to vector<1x8x8x128xf32>
    %89 = vector.shape_cast %88 : vector<1x8x8x128xf32> to vector<8x8x128xf32>
    %90 = vector.extract_strided_slice %79 {offsets = [80, 0], sizes = [64, 128], strides = [1, 1]} : vector<144x128xf32> to vector<64x128xf32>
    %91 = vector.shape_cast %90 : vector<64x128xf32> to vector<8x8x128xf32>
    %92 = arith.addf %89, %91 : vector<8x8x128xf32>
    %c1_40 = arith.constant 1 : index
    %c0_41 = arith.constant 0 : index
    %c0_42 = arith.constant 0 : index
    %c0_43 = arith.constant 0 : index
    %93 = vector.load %arg6[%c1_40, %c0_41, %c0_42, %c0_43] : memref<2x8x8x128xf32, #tpu.memory_space<vmem>>, vector<1x8x8x128xf32>
    %94 = vector.shape_cast %93 : vector<1x8x8x128xf32> to vector<8x8x128xf32>
    %95 = vector.shape_cast %92 : vector<8x8x128xf32> to vector<1x8x8x128xf32>
    tpu.vector_store %arg6[%c1_40, %c0_41, %c0_42, %c0_43], %95 {strides = array<i32>} : memref<2x8x8x128xf32, #tpu.memory_space<vmem>>, vector<1x8x8x128xf32>,
    return
  }
  func.func @transform_0(%arg0: i32) -> (i32, i32, i32, i32, i32) {
    %c0_i32 = arith.constant 0 : i32
    %c0_i32_0 = arith.constant 0 : i32
    %c0_i32_1 = arith.constant 0 : i32
    %c0_i32_2 = arith.constant 0 : i32
    %c0_i32_3 = arith.constant 0 : i32
    return %c0_i32, %arg0, %c0_i32_0, %c0_i32_1, %c0_i32_2 : i32, i32, i32, i32, i32
  }
  func.func @transform_1(%arg0: i32) -> (i32, i32, i32, i32) {
    %c0_i32 = arith.constant 0 : i32
    %c0_i32_0 = arith.constant 0 : i32
    %c0_i32_1 = arith.constant 0 : i32
    %c0_i32_2 = arith.constant 0 : i32
    %c0_i32_3 = arith.constant 0 : i32
    return %c0_i32, %c0_i32_0, %c0_i32_1, %c0_i32_2 : i32, i32, i32, i32
  }
  func.func @transform_2(%arg0: i32) -> (i32, i32) {
    %c0_i32 = arith.constant 0 : i32
    %c0_i32_0 = arith.constant 0 : i32
    %c0_i32_1 = arith.constant 0 : i32
    return %c0_i32, %c0_i32_0 : i32, i32
  }
  func.func @transform_3(%arg0: i32) -> (i32, i32) {
    %c0_i32 = arith.constant 0 : i32
    %c0_i32_0 = arith.constant 0 : i32
    %c0_i32_1 = arith.constant 0 : i32
    return %c0_i32, %c0_i32_0 : i32, i32
  }
  func.func @transform_4(%arg0: i32) -> (i32, i32) {
    %c0_i32 = arith.constant 0 : i32
    %c0_i32_0 = arith.constant 0 : i32
    %c0_i32_1 = arith.constant 0 : i32
    return %c0_i32, %c0_i32_0 : i32, i32
  }
  func.func @transform_5(%arg0: i32) -> (i32, i32, i32, i32) {
    %c0_i32 = arith.constant 0 : i32
    %c0_i32_0 = arith.constant 0 : i32
    %c0_i32_1 = arith.constant 0 : i32
    %c0_i32_2 = arith.constant 0 : i32
    return %arg0, %c0_i32, %c0_i32_0, %c0_i32_1 : i32, i32, i32, i32
  }
}

</mosaic_0001>

<bundles_post_ra>
// kernel: residual_layer.1
= control target key start
LH: loop header
LB: loop body
LE: loop exit
PB: predicated region body
PF: predicated region fallthrough
CT: control target
= control target key end

     0   :  { %s3023_s0 = inlined_call_operand.vmem [shape: f32[3,2,10,8,128], index: 0, kind: input, shape index: {}]   ;;  %s3024_s1 = inlined_call_operand.vmem [shape: bf16[3,3,128,32], index: 1, kind: input, shape index: {}]   ;;  %s3025_s2 = inlined_call_operand.vmem [shape: f32[1,32], index: 2, kind: input, shape index: {}]   ;;  %s3026_s3 = inlined_call_operand.vmem [shape: bf16[32,128], index: 3, kind: input, shape index: {}]   ;;  %s3027_s4 = inlined_call_operand.vmem [shape: f32[1,128], index: 4, kind: input, shape index: {}]   ;;  %s3028_s5 = inlined_call_operand.hbm [shape: f32[2,8,8,128], index: 5, kind: output, shape index: {}]  }
   0x1   :  { %v2202_v0 = vld [vmem:[%s3024_s1 + $0xf8] sm:$0xff]  ;;  %v2201_v2 = vld [vmem:[%s3024_s1 + $0xf0] sm:$0xff]  ;;  %v2200_v4 = vld [vmem:[%s3024_s1 + $0xe8] sm:$0xff] }
   0x2   :  { %v2178_v1 = vld [vmem:[%s3024_s1 + $0x38] sm:$0xff]  ;;  %328 = vmatpush.bf16.msra.mxu0 %v2202_v0  ;;  %2245 = vmatpush.bf16.msra.mxu2 %v2202_v0  ;;  %v2177_v3 = vld [vmem:[%s3024_s1 + $0x30] sm:$0xff]  ;;  %v2176_v5 = vld [vmem:[%s3024_s1 + $0x28] sm:$0xff] }
   0x3   :  { %450 = vmatpush.bf16.msra.mxu1 %v2178_v1  ;;  %2253 = vmatpush.bf16.msra.mxu3 %v2178_v1  ;;  %v2199_v6 = vld [vmem:[%s3024_s1 + $0xe0] sm:$0xff] }
   0x4   :  { %v2175_v7 = vld [vmem:[%s3024_s1 + $0x20] sm:$0xff] }
   0x6   :  { %329 = vmatpush.bf16.msra.mxu0 %v2201_v2  ;;  %2246 = vmatpush.bf16.msra.mxu2 %v2201_v2 }
   0x7   :  { %451 = vmatpush.bf16.msra.mxu1 %v2177_v3  ;;  %2254 = vmatpush.bf16.msra.mxu3 %v2177_v3 }
   0xa   :  { %330 = vmatpush.bf16.msra.mxu0 %v2200_v4  ;;  %2247 = vmatpush.bf16.msra.mxu2 %v2200_v4 }
   0xb   :  { %452 = vmatpush.bf16.msra.mxu1 %v2176_v5  ;;  %2255 = vmatpush.bf16.msra.mxu3 %v2176_v5 }
   0xc   :  { %10 = vsyncpa [#allocation3], 0  ;;  %v2198_v8 = vld [vmem:[%s3024_s1 + $0xd8] sm:$0xff]  ;;  %v167_v9 = vld [vmem:[%s3023_s0 + $0x8] sm:$0xff]  ;;  %vm1695_vm0 = vcmask 261120   ;;  %s2308_s12 = smov [#allocation2]  }
   0xd   :  { %v168_v10 = vld [vmem:[%s3023_s0 + $0x10] sm:$0xff]  ;;  %v177_v11 = vld [vmem:[%s3023_s0 + $0x58] sm:$0xff]  ;;  %v178_v12 = vld [vmem:[%s3023_s0 + $0x60] sm:$0xff]  ;;  %v187_v16 = vmax.f32 %v167_v9, 0.0  ;;  %s1814_s14 = sshll.u32 %s3028_s5, 4  ;;  %s2309_s17 = smov 128   ;;  %s1815_s14 = int_to_ptr.hbm [resolvable:$true] %s1814_s14 }
   0xe   :  { %331 = vmatpush.bf16.msra.mxu0 %v2199_v6  ;;  %2248 = vmatpush.bf16.msra.mxu2 %v2199_v6  ;;  %v2174_v13 = vld [vmem:[%s3024_s1 + $0x18] sm:$0xff]  ;;  %v166_v14 = vld [vmem:[%s3023_s0] sm:$0xff]  ;;  %v176_v15 = vld [vmem:[%s3023_s0 + $0x50] sm:$0xff]  ;;  %v188_v17 = vmax.f32 %v168_v10, 0.0  ;;  %v197_v18 = vmax.f32 %v177_v11, 0.0  ;;  %v198_v19 = vmax.f32 %v178_v12, 0.0 }
   0xf   :  { %453 = vmatpush.bf16.msra.mxu1 %v2175_v7  ;;  %2256 = vmatpush.bf16.msra.mxu3 %v2175_v7  ;;  %v2197_v20 = vld [vmem:[%s3024_s1 + $0xd0] sm:$0xff]  ;;  %v186_v21 = vmax.f32 %v166_v14, 0.0  ;;  %v196_v22 = vmax.f32 %v176_v15, 0.0  ;;  %v207_v24 = vpack.c.bf16 %v187_v16, %v187_v16  ;;  %v2196_v28 = vld [vmem:[%s3024_s1 + $0xc8] sm:$0xff]  ;;  %v2195_v36 = vld [vmem:[%s3024_s1 + $0xc0] sm:$0xff] }
  0x10   :  { %v2173_v23 = vld [vmem:[%s3024_s1 + $0x10] sm:$0xff]  ;;  %v2395_v25 = vpack.c.bf16 %v188_v17, %v188_v17  ;;  %v217_v26 = vpack.c.bf16 %v197_v18, %v197_v18  ;;  %v2397_v27 = vpack.c.bf16 %v198_v19, %v198_v19  ;;  %v2172_v31 = vld [vmem:[%s3024_s1 + $0x8] sm:$0xff]  ;;  %v2171_v39 = vld [vmem:[%s3024_s1] sm:$0xff] }
  0x11   :  { %v206_v29 = vpack.c.bf16 %v186_v21, %v186_v21  ;;  %v2402_v30 = vpack.c.bf16 %v196_v22, %v196_v22  ;;  %v244_v32 = vunpack.c.l.b16 %v207_v24  ;;  %v2210_v40 = vld [vmem:[%s3024_s1 + $0x138] sm:$0xff]  ;;  %v170_v47 = vld [vmem:[%s3023_s0 + $0x20] sm:$0xff]  ;;  %v179_v48 = vld [vmem:[%s3023_s0 + $0x68] sm:$0xff] }
  0x12   :  { %332 = vmatpush.bf16.msra.mxu0 %v2198_v8  ;;  %2249 = vmatpush.bf16.msra.mxu2 %v2198_v8  ;;  %v245_v33 = vunpack.c.l.b16 %v2395_v25  ;;  %v254_v34 = vunpack.c.l.b16 %v217_v26  ;;  %v255_v35 = vunpack.c.l.b16 %v2397_v27  ;;  %v2226_v41 = vld [vmem:[%s3024_s1 + $0x1b8] sm:$0xff]  ;;  %v180_v49 = vld [vmem:[%s3023_s0 + $0x70] sm:$0xff]  ;;  %v190_v54 = vmax.f32 %v170_v47, 0.0  ;;  %v2208_v58 = vld [vmem:[%s3024_s1 + $0x128] sm:$0xff] }
  0x13   :  { %454 = vmatpush.bf16.msra.mxu1 %v2174_v13  ;;  %2257 = vmatpush.bf16.msra.mxu3 %v2174_v13  ;;  %v383_v37 = vunpack.c.l.b16 %v206_v29  ;;  %v253_v38 = vunpack.c.l.b16 %v2402_v30  ;;  %v169_v44 = vld [vmem:[%s3023_s0 + $0x18] sm:$0xff]  ;;  %v2209_v51 = vld [vmem:[%s3024_s1 + $0x130] sm:$0xff]  ;;  %v199_v55 = vmax.f32 %v179_v48, 0.0  ;;  %v200_v56 = vmax.f32 %v180_v49, 0.0  ;;  %v2224_v59 = vld [vmem:[%s3024_s1 + $0x1a8] sm:$0xff] }
  0x14   :  { %v262_v42 = vpack.c.b16 %v245_v33, %v244_v32  ;;  %v267_v43 = vpack.c.b16 %v255_v35, %v254_v34  ;;  %v2186_v50 = vld [vmem:[%s3024_s1 + $0x78] sm:$0xff]  ;;  %v2225_v52 = vld [vmem:[%s3024_s1 + $0x1b0] sm:$0xff]  ;;  %v189_v53 = vmax.f32 %v169_v44, 0.0  ;;  %v2461_v61 = vpack.c.bf16 %v190_v54, %v190_v54  ;;  %v2184_v0 = vld [vmem:[%s3024_s1 + $0x68] sm:$0xff] }
  0x15   :  { %v384_v45 = vpack.c.b16 %v244_v32, %v383_v37  ;;  %v2431_v46 = vpack.c.b16 %v254_v34, %v253_v38  ;;  %v2185_v57 = vld [vmem:[%s3024_s1 + $0x70] sm:$0xff]  ;;  %v219_v62 = vpack.c.bf16 %v199_v55, %v199_v55  ;;  %v2463_v63 = vpack.c.bf16 %v200_v56, %v200_v56  ;;  %v2223_v1 = vld [vmem:[%s3024_s1 + $0x1a0] sm:$0xff]  ;;  %v2222_v8 = vld [vmem:[%s3024_s1 + $0x198] sm:$0xff] }
  0x16   :  { %333 = vmatpush.bf16.msra.mxu0 %v2197_v20  ;;  %2250 = vmatpush.bf16.msra.mxu2 %v2197_v20  ;;  %v209_v60 = vpack.c.bf16 %v189_v53, %v189_v53  ;;  %v2207_v2 = vld [vmem:[%s3024_s1 + $0x120] sm:$0xff]  ;;  %v247_v4 = vunpack.c.l.b16 %v2461_v61  ;;  %v2206_v9 = vld [vmem:[%s3024_s1 + $0x118] sm:$0xff]  ;;  %v171_v12 = vld [vmem:[%s3023_s0 + $0x28] sm:$0xff] }
  0x17   :  { %455 = vmatpush.bf16.msra.mxu1 %v2173_v23  ;;  %2258 = vmatpush.bf16.msra.mxu3 %v2173_v23  ;;  %v256_v5 = vunpack.c.l.b16 %v219_v62  ;;  %v257_v6 = vunpack.c.l.b16 %v2463_v63  ;;  %v2183_v7 = vld [vmem:[%s3024_s1 + $0x60] sm:$0xff]  ;;  %v172_v15 = vld [vmem:[%s3023_s0 + $0x30] sm:$0xff]  ;;  %v181_v16 = vld [vmem:[%s3023_s0 + $0x78] sm:$0xff]  ;;  %v191_v20 = vmax.f32 %v171_v12, 0.0 }
  0x18   :  { %v246_v3 = vunpack.c.l.b16 %v209_v60  ;;  %v182_v17 = vld [vmem:[%s3023_s0 + $0x80] sm:$0xff]  ;;  %v2182_v18 = vld [vmem:[%s3024_s1 + $0x58] sm:$0xff]  ;;  %v2221_v19 = vld [vmem:[%s3024_s1 + $0x190] sm:$0xff]  ;;  %v192_v21 = vmax.f32 %v172_v15, 0.0  ;;  %v201_v22 = vmax.f32 %v181_v16, 0.0 }
  0x19   :  { %v268_v11 = vpack.c.b16 %v257_v6, %v256_v5  ;;  %v2494_v14 = vpack.c.b16 %v256_v5, %v255_v35  ;;  %v202_v23 = vmax.f32 %v182_v17, 0.0  ;;  %v2205_v24 = vld [vmem:[%s3024_s1 + $0x110] sm:$0xff]  ;;  %v2234_v25 = vld [vmem:[%s3024_s1 + $0x1f8] sm:$0xff]  ;;  %v2220_v27 = vld [vmem:[%s3024_s1 + $0x188] sm:$0xff]  ;;  %v211_v29 = vpack.c.bf16 %v191_v20, %v191_v20 }
  0x1a   :  { %334 = vmatpush.bf16.msra.mxu0 %v2196_v28  ;;  %2251 = vmatpush.bf16.msra.mxu2 %v2196_v28  ;;  %v263_v10 = vpack.c.b16 %v247_v4, %v246_v3  ;;  %v2490_v13 = vpack.c.b16 %v246_v3, %v245_v33  ;;  %v2181_v26 = vld [vmem:[%s3024_s1 + $0x50] sm:$0xff]  ;;  %v2204_v28 = vld [vmem:[%s3024_s1 + $0x108] sm:$0xff]  ;;  %v221_v32 = vpack.c.bf16 %v201_v22, %v201_v22  ;;  %v173_v47 = vld [vmem:[%s3023_s0 + $0x38] sm:$0xff] }
  0x1b   :  { %456 = vmatpush.bf16.msra.mxu1 %v2172_v31  ;;  %2259 = vmatpush.bf16.msra.mxu3 %v2172_v31  ;;  %v212_v31 = vpack.c.bf16 %v192_v21, %v192_v21  ;;  %v222_v33 = vpack.c.bf16 %v202_v23, %v202_v23  ;;  %v2233_v34 = vld [vmem:[%s3024_s1 + $0x1f0] sm:$0xff]  ;;  %v2180_v35 = vld [vmem:[%s3024_s1 + $0x48] sm:$0xff]  ;;  %v248_v37 = vunpack.c.l.b16 %v211_v29  ;;  %v2231_v53 = vld [vmem:[%s3024_s1 + $0x1e0] sm:$0xff]  ;;  %v193_v54 = vmax.f32 %v173_v47, 0.0 }
  0x1c   :  { %v2230_v60 = vld [vmem:[%s3024_s1 + $0x1d8] sm:$0xff]  ;;  %v175_v12 = vld [vmem:[%s3023_s0 + $0x48] sm:$0xff]  ;;  %v1922_v15 = vld [vmem:[%s3023_s0 + $0xa0] sm:$0xff] }
  0x1d   :  { %v2546_v48 = vpack.c.b16 %v248_v37, %v247_v4  ;;  %v2218_v61 = vld [vmem:[%s3024_s1 + $0x178] sm:$0xff]  ;;  %v213_v62 = vpack.c.bf16 %v193_v54, %v193_v54  ;;  %v1923_v16 = vld [vmem:[%s3023_s0 + $0xa8] sm:$0xff]  ;;  %v2227_v17 = vld [vmem:[%s3024_s1 + $0x1c0] sm:$0xff] }
  0x1e   :  { %335 = vmatpush.bf16.msra.mxu0 %v2195_v36  ;;  %2252 = vmatpush.bf16.msra.mxu2 %v2195_v36  ;;  %v2219_v36 = vld [vmem:[%s3024_s1 + $0x180] sm:$0xff]  ;;  %v650_v20 = vmax.f32 %v1923_v16, 0.0  ;;  %v2242_v21 = vld [vmem:[%s3024_s1 + $0x238] sm:$0xff]  ;;  %v2193_v22 = vld [vmem:[%s3024_s1 + $0xb0] sm:$0xff] }
  0x1f   :  { %457 = vmatpush.bf16.msra.mxu1 %v2171_v39  ;;  %2260 = vmatpush.bf16.msra.mxu3 %v2171_v39  ;;  %v249_v39 = vunpack.c.l.b16 %v212_v31  ;;  %v250_v3 = vunpack.c.l.b16 %v213_v62  ;;  %v2217_v23 = vld [vmem:[%s3024_s1 + $0x170] sm:$0xff]  ;;  %v1927_v47 = vld [vmem:[%s3023_s0 + $0xc8] sm:$0xff] }
  0x20   :  { %v2241_v30 = vld [vmem:[%s3024_s1 + $0x230] sm:$0xff] }
  0x21   :  { %336 = vmatmul.bf16.vlgmr.msra.gmra.mxu0 %v262_v42  ;;  %361 = vmatmul.bf16.vlgmr.msra.gmra.mxu2 %v267_v43  ;;  %v2232_v42 = vld [vmem:[%s3024_s1 + $0x1e8] sm:$0xff]  ;;  %v2179_v43 = vld [vmem:[%s3024_s1 + $0x40] sm:$0xff]  ;;  %v264_v44 = vpack.c.b16 %v249_v39, %v248_v37 }
  0x22   :  { %931 = vmatpush.bf16.msrb.mxu0 %v2210_v40  ;;  %556 = vmatpush.bf16.msrb.mxu2 %v2226_v41  ;;  %v258_v40 = vunpack.c.l.b16 %v221_v32  ;;  %v259_v41 = vunpack.c.l.b16 %v222_v33 }
  0x23   :  { %458 = vmatmul.bf16.vlgmr.msra.gmra.mxu1 %v384_v45  ;;  %483 = vmatmul.bf16.vlgmr.msra.gmra.mxu3 %v2431_v46 }
  0x24   :  { %791 = vmatpush.bf16.msrb.mxu3 %v2186_v50  ;;  %1055 = vmatpush.bf16.msrb.mxu1 %v2234_v25  ;;  %v269_v45 = vpack.c.b16 %v259_v41, %v258_v40  ;;  %v2548_v49 = vpack.c.b16 %v258_v40, %v257_v6  ;;  %v174_v50 = vld [vmem:[%s3023_s0 + $0x40] sm:$0xff] }
  0x25   :  { %v194_v55 = vmax.f32 %v174_v50, 0.0 }
  0x26   :  { %932 = vmatpush.bf16.msrb.mxu0 %v2209_v51  ;;  %557 = vmatpush.bf16.msrb.mxu2 %v2225_v52  ;;  %v183_v51 = vld [vmem:[%s3023_s0 + $0x88] sm:$0xff]  ;;  %v184_v52 = vld [vmem:[%s3023_s0 + $0x90] sm:$0xff] }
  0x27   :  { %v203_v56 = vmax.f32 %v183_v51, 0.0  ;;  %v214_v63 = vpack.c.bf16 %v194_v55, %v194_v55  ;;  %v654_v51 = vmax.f32 %v1927_v47, 0.0 }
  0x28   :  { %792 = vmatpush.bf16.msrb.mxu3 %v2185_v57  ;;  %1056 = vmatpush.bf16.msrb.mxu1 %v2233_v34  ;;  %v204_v57 = vmax.f32 %v184_v52, 0.0  ;;  %v1924_v34 = vld [vmem:[%s3023_s0 + $0xb0] sm:$0xff]  ;;  %v2240_v52 = vld [vmem:[%s3024_s1 + $0x228] sm:$0xff] }
  0x29   :  { %v251_v4 = vunpack.c.l.b16 %v214_v63  ;;  %v674_v55 = vpack.c.bf16 %v654_v51, %v654_v51 }
  0x2a   :  { %933 = vmatpush.bf16.msrb.mxu0 %v2208_v58  ;;  %558 = vmatpush.bf16.msrb.mxu2 %v2224_v59  ;;  %v2203_v58 = vld [vmem:[%s3024_s1 + $0x100] sm:$0xff]  ;;  %v2194_v59 = vld [vmem:[%s3024_s1 + $0xb8] sm:$0xff] }
  0x2c   :  { %793 = vmatpush.bf16.msrb.mxu3 %v2184_v0  ;;  %1057 = vmatpush.bf16.msrb.mxu1 %v2232_v42  ;;  %v223_v0 = vpack.c.bf16 %v203_v56, %v203_v56 }
  0x2e   :  { %559 = vmatpush.bf16.msrb.mxu2 %v2223_v1  ;;  %934 = vmatpush.bf16.msrb.mxu0 %v2207_v2  ;;  %v2576_v1 = vpack.c.bf16 %v204_v57, %v204_v57  ;;  %v2229_v2 = vld [vmem:[%s3024_s1 + $0x1d0] sm:$0xff]  ;;  %v260_v5 = vunpack.c.l.b16 %v223_v0  ;;  %v712_v57 = vunpack.c.l.b16 %v674_v55 }
  0x30   :  { %794 = vmatpush.bf16.msrb.mxu3 %v2183_v7  ;;  %1058 = vmatpush.bf16.msrb.mxu1 %v2231_v53  ;;  %v261_v6 = vunpack.c.l.b16 %v2576_v1  ;;  %v2228_v7 = vld [vmem:[%s3024_s1 + $0x1c8] sm:$0xff]  ;;  %v2191_v53 = vld [vmem:[%s3024_s1 + $0xa0] sm:$0xff]  ;;  %v2040_v1 = vld [vmem:[%s3023_s0 + $0x150] sm:$0xff] }
  0x31   :  { %341 = vmatmul.bf16.gmra.mxu0 %v263_v10  ;;  %366 = vmatmul.bf16.gmra.mxu2 %v268_v11  ;;  %v2587_v10 = vpack.c.b16 %v250_v3, %v249_v39  ;;  %v2589_v11 = vpack.c.b16 %v260_v5, %v259_v41  ;;  %v2216_v39 = vld [vmem:[%s3024_s1 + $0x168] sm:$0xff] }
  0x32   :  { %560 = vmatpush.bf16.msrb.mxu2 %v2222_v8  ;;  %935 = vmatpush.bf16.msrb.mxu0 %v2206_v9  ;;  %v265_v8 = vpack.c.b16 %v251_v4, %v250_v3  ;;  %v270_v9 = vpack.c.b16 %v261_v6, %v260_v5  ;;  %v2239_v3 = vld [vmem:[%s3024_s1 + $0x220] sm:$0xff] }
  0x33   :  { %463 = vmatmul.bf16.gmra.mxu1 %v2490_v13  ;;  %488 = vmatmul.bf16.gmra.mxu3 %v2494_v14 }
  0x34   :  { %795 = vmatpush.bf16.msrb.mxu3 %v2182_v18  ;;  %1059 = vmatpush.bf16.msrb.mxu1 %v2230_v60  ;;  %v195_v18 = vmax.f32 %v175_v12, 0.0  ;;  %v1929_v60 = vld [vmem:[%s3023_s0 + $0xd8] sm:$0xff] }
  0x35   :  { %v656_v63 = vmax.f32 %v1929_v60, 0.0  ;;  %v2190_v12 = vld [vmem:[%s3024_s1 + $0x98] sm:$0xff] }
  0x36   :  { %561 = vmatpush.bf16.msrb.mxu2 %v2221_v19  ;;  %936 = vmatpush.bf16.msrb.mxu0 %v2205_v24  ;;  %v649_v19 = vmax.f32 %v1922_v15, 0.0  ;;  %v215_v24 = vpack.c.bf16 %v195_v18, %v195_v18 }
  0x38   :  { %796 = vmatpush.bf16.msrb.mxu3 %v2181_v26  ;;  %1060 = vmatpush.bf16.msrb.mxu1 %v2229_v2  ;;  %v669_v25 = vpack.c.bf16 %v649_v19, %v649_v19  ;;  %v670_v26 = vpack.c.bf16 %v650_v20, %v650_v20  ;;  %v676_v2 = vpack.c.bf16 %v656_v63, %v656_v63  ;;  %v2238_v20 = vld [vmem:[%s3024_s1 + $0x218] sm:$0xff] }
  0x3a   :  { %562 = vmatpush.bf16.msrb.mxu2 %v2220_v27  ;;  %937 = vmatpush.bf16.msrb.mxu0 %v2204_v28  ;;  %v252_v27 = vunpack.c.l.b16 %v215_v24  ;;  %v707_v28 = vunpack.c.l.b16 %v669_v25  ;;  %v708_v29 = vunpack.c.l.b16 %v670_v26  ;;  %v714_v5 = vunpack.c.l.b16 %v676_v2  ;;  %v1932_v26 = vld [vmem:[%s3023_s0 + $0xf0] sm:$0xff] }
  0x3c   :  { %797 = vmatpush.bf16.msrb.mxu3 %v2180_v35  ;;  %1061 = vmatpush.bf16.msrb.mxu1 %v2228_v7  ;;  %v266_v31 = vpack.c.b16 %v253_v38, %v252_v27  ;;  %v388_v32 = vpack.c.b16 %v252_v27, %v251_v4  ;;  %v725_v33 = vpack.c.b16 %v708_v29, %v707_v28  ;;  %v1925_v35 = vld [vmem:[%s3023_s0 + $0xb8] sm:$0xff]  ;;  %v2192_v38 = vld [vmem:[%s3024_s1 + $0xa8] sm:$0xff] }
  0x3d   :  { %v652_v37 = vmax.f32 %v1925_v35, 0.0  ;;  %v1933_v28 = vld [vmem:[%s3023_s0 + $0xf8] sm:$0xff] }
  0x3e   :  { %563 = vmatpush.bf16.msrb.mxu2 %v2219_v36  ;;  %938 = vmatpush.bf16.msrb.mxu0 %v2203_v58  ;;  %v651_v36 = vmax.f32 %v1924_v34, 0.0  ;;  %v2213_v34 = vld [vmem:[%s3024_s1 + $0x150] sm:$0xff] }
  0x40   :  { %798 = vmatpush.bf16.msrb.mxu3 %v2179_v43  ;;  %1062 = vmatpush.bf16.msrb.mxu1 %v2227_v17  ;;  %v671_v40 = vpack.c.bf16 %v651_v36, %v651_v36  ;;  %v2214_v17 = vld [vmem:[%s3024_s1 + $0x158] sm:$0xff] }
  0x41   :  { %346 = vmatmul.bf16.gmra.mxu0 %v264_v44  ;;  %371 = vmatmul.bf16.gmra.mxu2 %v269_v45  ;;  %v1926_v45 = vld [vmem:[%s3023_s0 + $0xc0] sm:$0xff] }
  0x42   :  { %1290 = vmatpush.bf16.msra.mxu2 %v2194_v59  ;;  %1554 = vmatpush.bf16.msra.mxu0 %v2242_v21  ;;  %v709_v41 = vunpack.c.l.b16 %v671_v40  ;;  %v653_v50 = vmax.f32 %v1926_v45, 0.0  ;;  %v1928_v59 = vld [vmem:[%s3023_s0 + $0xd0] sm:$0xff] }
  0x43   :  { %468 = vmatmul.bf16.gmra.mxu1 %v2546_v48  ;;  %493 = vmatmul.bf16.gmra.mxu3 %v2548_v49  ;;  %v655_v62 = vmax.f32 %v1928_v59, 0.0 }
  0x44   :  { %1430 = vmatpush.bf16.msra.mxu3 %v2218_v61  ;;  %v865_v43 = vpack.c.b16 %v709_v41, %v708_v29  ;;  %v673_v54 = vpack.c.bf16 %v653_v50, %v653_v50  ;;  %v2215_v61 = vld [vmem:[%s3024_s1 + $0x160] sm:$0xff] }
  0x45   :  { %v675_v0 = vpack.c.bf16 %v655_v62, %v655_v62 }
  0x46   :  { %1291 = vmatpush.bf16.msra.mxu2 %v2193_v22  ;;  %1555 = vmatpush.bf16.msra.mxu0 %v2241_v30  ;;  %v711_v56 = vunpack.c.l.b16 %v673_v54  ;;  %v1935_v54 = vld [vmem:[%s3023_s0 + $0x108] sm:$0xff] }
  0x47   :  { %v713_v4 = vunpack.c.l.b16 %v675_v0 }
  0x48   :  { %1431 = vmatpush.bf16.msra.mxu3 %v2217_v23  ;;  %v727_v58 = vpack.c.b16 %v712_v57, %v711_v56 }
  0x49   :  { %v867_v7 = vpack.c.b16 %v713_v4, %v712_v57  ;;  %v662_v57 = vmax.f32 %v1935_v54, 0.0 }
  0x4a   :  { %1292 = vmatpush.bf16.msra.mxu2 %v2192_v38  ;;  %1556 = vmatpush.bf16.msra.mxu0 %v2240_v52  ;;  %v1934_v52 = vld [vmem:[%s3023_s0 + $0x100] sm:$0xff] }
  0x4b   :  { %v682_v63 = vpack.c.bf16 %v662_v57, %v662_v57 }
  0x4c   :  { %1432 = vmatpush.bf16.msra.mxu3 %v2216_v39 }
  0x4e   :  { %1293 = vmatpush.bf16.msra.mxu2 %v2191_v53  ;;  %1557 = vmatpush.bf16.msra.mxu0 %v2239_v3 }
  0x50   :  { %1433 = vmatpush.bf16.msra.mxu3 %v2215_v61 }
  0x51   :  { %351 = vmatmul.bf16.gmra.mxu0 %v265_v8  ;;  %376 = vmatmul.bf16.gmra.mxu2 %v270_v9  ;;  %v728_v8 = vpack.c.b16 %v714_v5, %v713_v4  ;;  %v1930_v9 = vld [vmem:[%s3023_s0 + $0xe0] sm:$0xff]  ;;  %v720_v4 = vunpack.c.l.b16 %v682_v63 }
  0x52   :  { %v657_v15 = vmax.f32 %v1930_v9, 0.0  ;;  %1294 = vmatpush.bf16.msra.mxu2 %v2190_v12  ;;  %1558 = vmatpush.bf16.msra.mxu0 %v2238_v20 }
  0x53   :  { %473 = vmatmul.bf16.gmra.mxu1 %v2587_v10  ;;  %498 = vmatmul.bf16.gmra.mxu3 %v2589_v11 }
  0x54   :  { %1434 = vmatpush.bf16.msra.mxu3 %v2214_v17  ;;  %v677_v18 = vpack.c.bf16 %v657_v15, %v657_v15  ;;  %v1936_v15 = vld [vmem:[%s3023_s0 + $0x110] sm:$0xff] }
  0x55   :  { %v663_v20 = vmax.f32 %v1936_v15, 0.0 }
  0x56   :  { %v715_v21 = vunpack.c.l.b16 %v677_v18  ;;  %v1937_v18 = vld [vmem:[%s3023_s0 + $0x118] sm:$0xff] }
  0x58   :  { %v868_v23 = vpack.c.b16 %v715_v21, %v714_v5  ;;  %1435 = vmatpush.bf16.msra.mxu3 %v2213_v34 }
  0x61   :  { %356 = vmatmul.bf16.gmra.mxu0 %v266_v31  ;;  %564 = vmatmul.bf16.vlgmr.msrb.gmra.mxu2 %v2490_v13  ;;  %v672_v13 = vpack.c.bf16 %v652_v37, %v652_v37  ;;  %v659_v31 = vmax.f32 %v1932_v26, 0.0 }
  0x63   :  { %478 = vmatmul.bf16.gmra.mxu1 %v388_v32  ;;  %799 = vmatmul.bf16.vlgmr.msrb.gmra.mxu3 %v725_v33  ;;  %v710_v42 = vunpack.c.l.b16 %v672_v13  ;;  %v2189_v33 = vld [vmem:[%s3024_s1 + $0x90] sm:$0xff]  ;;  %v679_v37 = vpack.c.bf16 %v659_v31, %v659_v31  ;;  %v2187_v31 = vld [vmem:[%s3024_s1 + $0x80] sm:$0xff] }
  0x64   :  { %1295 = vmatpush.bf16.msra.mxu2 %v2189_v33  ;;  %v2237_v13 = vld [vmem:[%s3024_s1 + $0x210] sm:$0xff] }
  0x65   :  { %v726_v44 = vpack.c.b16 %v710_v42, %v709_v41  ;;  %v717_v41 = vunpack.c.l.b16 %v679_v37  ;;  %1559 = vmatpush.bf16.msra.mxu0 %v2237_v13  ;;  %v1938_v13 = vld [vmem:[%s3023_s0 + $0x120] sm:$0xff] }
  0x71   :  { %569 = vmatmul.bf16.gmra.mxu2 %v2546_v48  ;;  %939 = vmatmul.bf16.vlgmr.msrb.gmra.mxu0 %v865_v43  ;;  %v866_v48 = vpack.c.b16 %v711_v56, %v710_v42  ;;  %v661_v56 = vmax.f32 %v1934_v52, 0.0 }
  0x73   :  { %804 = vmatmul.bf16.gmra.mxu3 %v726_v44  ;;  %1063 = vmatmul.bf16.vlgmr.msrb.gmra.mxu1 %v726_v44  ;;  %v681_v60 = vpack.c.bf16 %v661_v56, %v661_v56 }
  0x75   :  { %v719_v3 = vunpack.c.l.b16 %v681_v60 }
  0x77   :  { %v731_v12 = vpack.c.b16 %v720_v4, %v719_v3 }
  0x81   :  { %574 = vmatmul.bf16.gmra.mxu2 %v2587_v10  ;;  %944 = vmatmul.bf16.gmra.mxu0 %v866_v48  ;;  %v1931_v10 = vld [vmem:[%s3023_s0 + $0xe8] sm:$0xff] }
  0x82   :  { %v658_v16 = vmax.f32 %v1931_v10, 0.0  ;;  %v2188_v48 = vld [vmem:[%s3024_s1 + $0x88] sm:$0xff] }
  0x83   :  { %809 = vmatmul.bf16.gmra.mxu3 %v727_v58  ;;  %1068 = vmatmul.bf16.gmra.mxu1 %v727_v58 }
  0x84   :  { %v678_v19 = vpack.c.bf16 %v658_v16, %v658_v16  ;;  %1296 = vmatpush.bf16.msra.mxu2 %v2188_v48  ;;  %v2236_v16 = vld [vmem:[%s3024_s1 + $0x208] sm:$0xff] }
  0x85   :  { %1560 = vmatpush.bf16.msra.mxu0 %v2236_v16  ;;  %v2244_v16 = vld [vmem:[%s3026_s3 + $0x8] sm:$0xff] }
  0x86   :  { %v716_v22 = vunpack.c.l.b16 %v678_v19  ;;  %1729 = vmatpush.bf16.msra.mxu1 %v2244_v16 }
  0x88   :  { %v729_v25 = vpack.c.b16 %v716_v22, %v715_v21  ;;  %v869_v45 = vpack.c.b16 %v717_v41, %v716_v22  ;;  %v664_v21 = vmax.f32 %v1937_v18, 0.0  ;;  %1297 = vmatpush.bf16.msra.mxu2 %v2187_v31 }
  0x91   :  { %579 = vmatmul.bf16.gmra.mxu2 %v388_v32  ;;  %949 = vmatmul.bf16.gmra.mxu0 %v867_v7  ;;  %v660_v32 = vmax.f32 %v1933_v28, 0.0 }
  0x93   :  { %814 = vmatmul.bf16.gmra.mxu3 %v728_v8  ;;  %1073 = vmatmul.bf16.gmra.mxu1 %v728_v8  ;;  %v680_v38 = vpack.c.bf16 %v660_v32, %v660_v32 }
  0x95   :  { %v718_v42 = vunpack.c.l.b16 %v680_v38 }
  0x97   :  { %v730_v51 = vpack.c.b16 %v718_v42, %v717_v41  ;;  %v870_v8 = vpack.c.b16 %v719_v3, %v718_v42  ;;  %v1939_v42 = vld [vmem:[%s3023_s0 + $0x128] sm:$0xff] }
  0x9e   :  { %v337_v24 = vpop.f32.mrf.mxu0 }
  0xa0   :  { %v459_v27 = vpop.f32.mrf.mxu1 }
  0xa1   :  { %v2679_v29 = vadd.f32 %v459_v27, %v337_v24  ;;  %584 = vmatmul.bf16.gmra.mxu2 %v2431_v46  ;;  %954 = vmatmul.bf16.gmra.mxu0 %v868_v23  ;;  %v683_v24 = vpack.c.bf16 %v663_v20, %v663_v20  ;;  %v684_v27 = vpack.c.bf16 %v664_v21, %v664_v21 }
  0xa3   :  { %819 = vmatmul.bf16.gmra.mxu3 %v729_v25  ;;  %1078 = vmatmul.bf16.gmra.mxu1 %v729_v25  ;;  %v721_v32 = vunpack.c.l.b16 %v683_v24  ;;  %v722_v33 = vunpack.c.l.b16 %v684_v27 }
  0xa4   :  { %v362_v35 = vpop.f32.mrf.mxu2 }
  0xa5   :  { %v732_v38 = vpack.c.b16 %v722_v33, %v721_v32 }
  0xa6   :  { %v484_v36 = vpop.f32.mrf.mxu3  ;;  %v339_v46 = vpop.f32.mrf.mxu0 }
  0xa7   :  { %v2688_v30 = vadd.f32 %v484_v36, %v362_v35  ;;  %v871_v36 = vpack.c.b16 %v721_v32, %v720_v4 }
  0xa8   :  { %v461_v39 = vpop.f32.mrf.mxu1 }
  0xa9   :  { %v2690_v40 = vadd.f32 %v461_v39, %v339_v46  ;;  %v185_v39 = vld [vmem:[%s3023_s0 + $0x98] sm:$0xff] }
  0xac   :  { %v364_v43 = vpop.f32.mrf.mxu2 }
  0xae   :  { %v486_v44 = vpop.f32.mrf.mxu3  ;;  %v342_v50 = vpop.f32.mrf.mxu0 }
  0xaf   :  { %v2695_v47 = vadd.f32 %v486_v44, %v364_v43  ;;  %v2235_v43 = vld [vmem:[%s3024_s1 + $0x200] sm:$0xff] }
  0xb0   :  { %v464_v53 = vpop.f32.mrf.mxu1  ;;  %1561 = vmatpush.bf16.msra.mxu0 %v2235_v43 }
  0xb1   :  { %v2703_v55 = vadd.f32 %v464_v53, %v342_v50  ;;  %589 = vmatmul.bf16.gmra.mxu2 %v2494_v14  ;;  %959 = vmatmul.bf16.gmra.mxu0 %v869_v45  ;;  %v2212_v14 = vld [vmem:[%s3024_s1 + $0x148] sm:$0xff]  ;;  %v205_v45 = vmax.f32 %v185_v39, 0.0  ;;  %v665_v50 = vmax.f32 %v1938_v13, 0.0 }
  0xb2   :  { %1436 = vmatpush.bf16.msra.mxu3 %v2212_v14 }
  0xb3   :  { %824 = vmatmul.bf16.gmra.mxu3 %v730_v51  ;;  %1083 = vmatmul.bf16.gmra.mxu1 %v730_v51  ;;  %v666_v51 = vmax.f32 %v1939_v42, 0.0  ;;  %v225_v54 = vpack.c.bf16 %v205_v45, %v205_v45  ;;  %v685_v56 = vpack.c.bf16 %v665_v50, %v665_v50 }
  0xb4   :  { %v367_v58 = vpop.f32.mrf.mxu2 }
  0xb5   :  { %v505_v60 = vunpack.c.l.b16 %v225_v54 }
  0xb6   :  { %v489_v59 = vpop.f32.mrf.mxu3  ;;  %v344_v62 = vpop.f32.mrf.mxu0 }
  0xb7   :  { %v2709_v61 = vadd.f32 %v489_v59, %v367_v58  ;;  %v686_v58 = vpack.c.bf16 %v666_v51, %v666_v51 }
  0xb8   :  { %v466_v0 = vpop.f32.mrf.mxu1 }
  0xb9   :  { %v2714_v2 = vadd.f32 %v466_v0, %v344_v62  ;;  %v724_v62 = vunpack.c.l.b16 %v686_v58  ;;  %v506_v0 = vpack.c.b16 %v505_v60, %v261_v6  ;;  %v1941_v6 = vld [vmem:[%s3023_s0 + $0x138] sm:$0xff] }
  0xbc   :  { %v369_v5 = vpop.f32.mrf.mxu2 }
  0xbe   :  { %v491_v7 = vpop.f32.mrf.mxu3  ;;  %v347_v10 = vpop.f32.mrf.mxu0 }
  0xbf   :  { %v2716_v9 = vadd.f32 %v491_v7, %v369_v5 }
  0xc0   :  { %v469_v17 = vpop.f32.mrf.mxu1 }
  0xc1   :  { %v2727_v19 = vadd.f32 %v469_v17, %v347_v10  ;;  %594 = vmatmul.bf16.gmra.mxu2 %v2548_v49  ;;  %964 = vmatmul.bf16.gmra.mxu0 %v870_v8  ;;  %v2211_v49 = vld [vmem:[%s3024_s1 + $0x140] sm:$0xff]  ;;  %v1940_v8 = vld [vmem:[%s3023_s0 + $0x130] sm:$0xff]  ;;  %s1812_s1 = sshll.u32 %s2308_s12, 4  ;;  %s1813_s1 = int_to_ptr.vmem [resolvable:$true] %s1812_s1 }
  0xc2   :  { %1437 = vmatpush.bf16.msra.mxu3 %v2211_v49  ;;  %v2038_v10 = vld [vmem:[%s3023_s0 + $0x140] sm:$0xff]  ;;  %v667_v18 = vmax.f32 %v1940_v8, 0.0 }
  0xc3   :  { %829 = vmatmul.bf16.gmra.mxu3 %v731_v12  ;;  %1088 = vmatmul.bf16.gmra.mxu1 %v731_v12  ;;  %v2039_v12 = vld [vmem:[%s3023_s0 + $0x148] sm:$0xff]  ;;  %v1148_v20 = vmax.f32 %v2038_v10, 0.0 }
  0xc4   :  { %v372_v22 = vpop.f32.mrf.mxu2  ;;  %v1149_v21 = vmax.f32 %v2039_v12, 0.0  ;;  %v687_v49 = vpack.c.bf16 %v667_v18, %v667_v18 }
  0xc5   :  { %v1168_v32 = vpack.c.bf16 %v1148_v20, %v1148_v20 }
  0xc6   :  { %v494_v23 = vpop.f32.mrf.mxu3  ;;  %v2732_v26 = vpop.f32.mrf.mxu0 }
  0xc7   :  { %v2730_v25 = vadd.f32 %v494_v23, %v372_v22  ;;  %v1150_v22 = vmax.f32 %v2040_v1, 0.0  ;;  %v668_v23 = vmax.f32 %v1941_v6, 0.0  ;;  %v1206_v39 = vunpack.c.l.b16 %v1168_v32 }
  0xc8   :  { %v2734_v28 = vpop.f32.mrf.mxu1 }
  0xcc   :  { %v374_v34 = vpop.f32.mrf.mxu2 }
  0xce   :  { %v496_v35 = vpop.f32.mrf.mxu3  ;;  %v352_v46 = vpop.f32.mrf.mxu0 }
  0xcf   :  { %v2742_v37 = vadd.f32 %v496_v35, %v374_v34  ;;  %v1170_v35 = vpack.c.bf16 %v1150_v22, %v1150_v22 }
  0xd0   :  { %v474_v41 = vpop.f32.mrf.mxu1 }
  0xd1   :  { %v2756_v44 = vadd.f32 %v474_v41, %v352_v46  ;;  %599 = vmatmul.bf16.gmra.mxu2 %v2589_v11  ;;  %969 = vmatmul.bf16.gmra.mxu0 %v871_v36  ;;  %v723_v11 = vunpack.c.l.b16 %v685_v56  ;;  %v688_v36 = vpack.c.bf16 %v668_v23, %v668_v23  ;;  %v1208_v41 = vunpack.c.l.b16 %v1170_v35  ;;  %v2041_v56 = vld [vmem:[%s3023_s0 + $0x158] sm:$0xff] }
  0xd3   :  { %834 = vmatmul.bf16.gmra.mxu3 %v732_v38  ;;  %1093 = vmatmul.bf16.gmra.mxu1 %v732_v38  ;;  %v872_v3 = vpack.c.b16 %v723_v11, %v722_v33  ;;  %v733_v7 = vpack.c.b16 %v724_v62, %v723_v11  ;;  %v1169_v33 = vpack.c.bf16 %v1149_v21, %v1149_v21  ;;  %v864_v38 = vunpack.c.l.b16 %v687_v49  ;;  %v2042_v11 = vld [vmem:[%s3023_s0 + $0x160] sm:$0xff] }
  0xd4   :  { %v377_v52 = vpop.f32.mrf.mxu2  ;;  %v1004_v42 = vunpack.c.l.b16 %v688_v36 }
  0xd5   :  { %v1207_v13 = vunpack.c.l.b16 %v1169_v33  ;;  %v873_v51 = vpack.c.b16 %v864_v38, %v724_v62  ;;  %v1152_v62 = vmax.f32 %v2042_v11, 0.0 }
  0xd6   :  { %v499_v53 = vpop.f32.mrf.mxu3  ;;  %v2761_v48 = vpop.f32.mrf.mxu0  ;;  %v1005_v54 = vpack.c.b16 %v1004_v42, %v864_v38 }
  0xd7   :  { %v2759_v57 = vadd.f32 %v499_v53, %v377_v52  ;;  %v1364_v53 = vpack.c.b16 %v1208_v41, %v1207_v13 }
  0xd8   :  { %v2763_v59 = vpop.f32.mrf.mxu1 }
  0xdc   :  { %v379_v63 = vpop.f32.mrf.mxu2 }
  0xde   :  { %v501_v14 = vpop.f32.mrf.mxu3  ;;  %v357_v5 = vpop.f32.mrf.mxu0 }
  0xdf   :  { %v2767_v4 = vadd.f32 %v501_v14, %v379_v63 }
  0xe0   :  { %v479_v15 = vpop.f32.mrf.mxu1 }
  0xe1   :  { %v2787_v17 = vadd.f32 %v479_v15, %v357_v5  ;;  %604 = vmatmul.bf16.gmra.mxu2 %v506_v0  ;;  %974 = vmatmul.bf16.gmra.mxu0 %v872_v3 }
  0xe3   :  { %839 = vmatmul.bf16.gmra.mxu3 %v733_v7  ;;  %1098 = vmatmul.bf16.gmra.mxu1 %v733_v7  ;;  %v1172_v7 = vpack.c.bf16 %v1152_v62, %v1152_v62 }
  0xe4   :  { %v565_v24 = vpop.f32.mrf.mxu2 }
  0xe5   :  { %v610_v27 = vadd.f32 %v565_v24, %v2679_v29  ;;  %v1224_v29 = vpack.c.b16 %v1207_v13, %v1206_v39  ;;  %v1210_v15 = vunpack.c.l.b16 %v1172_v7  ;;  %v2044_v24 = vld [vmem:[%s3023_s0 + $0x170] sm:$0xff]  ;;  %v477_v7 = vadd.f32 %v2763_v59, %v2761_v48 }
  0xe6   :  { %v800_v31 = vpop.f32.mrf.mxu3  ;;  %v2790_v34 = vpop.f32.mrf.mxu0 }
  0xe7   :  { %v845_v46 = vadd.f32 %v800_v31, %v610_v27 }
  0xec   :  { %v567_v43 = vpop.f32.mrf.mxu2 }
  0xed   :  { %v611_v45 = vadd.f32 %v567_v43, %v2690_v40  ;;  %v1151_v40 = vmax.f32 %v2041_v56, 0.0 }
  0xee   :  { %v802_v50 = vpop.f32.mrf.mxu3  ;;  %v940_v52 = vpop.f32.mrf.mxu0 }
  0xef   :  { %v846_v58 = vadd.f32 %v802_v50, %v611_v45  ;;  %v2796_v60 = vadd.f32 %v940_v52, %v845_v46  ;;  %v1171_v3 = vpack.c.bf16 %v1151_v40, %v1151_v40 }
  0xf1   :  { %979 = vmatmul.bf16.gmra.mxu0 %v873_v51  ;;  %1298 = vmatmul.bf16.vlgmr.msra.gmra.mxu2 %v1224_v29  ;;  %v1209_v12 = vunpack.c.l.b16 %v1171_v3 }
  0xf3   :  { %1438 = vmatmul.bf16.vlgmr.msra.gmra.mxu3 %v1364_v53  ;;  %1103 = vmatmul.bf16.gmra.mxu1 %v1005_v54  ;;  %v1225_v18 = vpack.c.b16 %v1209_v12, %v1208_v41  ;;  %v1365_v21 = vpack.c.b16 %v1210_v15, %v1209_v12  ;;  %v472_v41 = vadd.f32 %v2734_v28, %v2732_v26  ;;  %v2046_v54 = vld [vmem:[%s3023_s0 + $0x180] sm:$0xff] }
  0xf4   :  { %v570_v63 = vpop.f32.mrf.mxu2  ;;  %v1156_v28 = vmax.f32 %v2046_v54, 0.0 }
  0xf5   :  { %v612_v14 = vadd.f32 %v570_v63, %v2703_v55  ;;  %v2043_v55 = vld [vmem:[%s3023_s0 + $0x168] sm:$0xff] }
  0xf6   :  { %v805_v0 = vpop.f32.mrf.mxu3  ;;  %v942_v5 = vpop.f32.mrf.mxu0  ;;  %v1153_v27 = vmax.f32 %v2043_v55, 0.0  ;;  %v1176_v63 = vpack.c.bf16 %v1156_v28, %v1156_v28 }
  0xf7   :  { %v847_v8 = vadd.f32 %v805_v0, %v612_v14  ;;  %v2802_v10 = vadd.f32 %v942_v5, %v846_v58 }
  0xf8   :  { %v1173_v33 = vpack.c.bf16 %v1153_v27, %v1153_v27  ;;  %v1214_v5 = vunpack.c.l.b16 %v1176_v63 }
  0xfa   :  { %v1211_v39 = vunpack.c.l.b16 %v1173_v33  ;;  %v2243_v33 = vld [vmem:[%s3026_s3] sm:$0xff]  ;;  %s2310_s3 = smov 8  }
  0xfb   :  { %1730 = vmatpush.bf16.msra.mxu1 %v2243_v33 }
  0xfc   :  { %v572_v1 = vpop.f32.mrf.mxu2  ;;  %v1226_v50 = vpack.c.b16 %v1211_v39, %v1210_v15 }
  0xfd   :  { %v613_v6 = vadd.f32 %v572_v1, %v2714_v2  ;;  %v1154_v2 = vmax.f32 %v2044_v24, 0.0 }
  0xfe   :  { %v807_v16 = vpop.f32.mrf.mxu3  ;;  %v945_v20 = vpop.f32.mrf.mxu0 }
  0xff   :  { %v848_v22 = vadd.f32 %v807_v16, %v613_v6  ;;  %v2808_v23 = vadd.f32 %v945_v20, %v847_v8  ;;  %v1174_v36 = vpack.c.bf16 %v1154_v2, %v1154_v2 }
 0x101   :  { %1303 = vmatmul.bf16.gmra.mxu2 %v1225_v18  ;;  %1562 = vmatmul.bf16.vlgmr.msra.gmra.mxu0 %v1225_v18  ;;  %v1212_v13 = vunpack.c.l.b16 %v1174_v36 }
 0x103   :  { %1443 = vmatmul.bf16.gmra.mxu3 %v1365_v21  ;;  %v1366_v29 = vpack.c.b16 %v1212_v13, %v1211_v39  ;;  %v2048_v21 = vld [vmem:[%s3023_s0 + $0x190] sm:$0xff] }
 0x104   :  { %v575_v31 = vpop.f32.mrf.mxu2  ;;  %v1158_v59 = vmax.f32 %v2048_v21, 0.0 }
 0x105   :  { %v614_v49 = vadd.f32 %v575_v31, %v2727_v19  ;;  %v2045_v19 = vld [vmem:[%s3023_s0 + $0x178] sm:$0xff] }
 0x106   :  { %v810_v32 = vpop.f32.mrf.mxu3  ;;  %v947_v35 = vpop.f32.mrf.mxu0  ;;  %v1155_v26 = vmax.f32 %v2045_v19, 0.0  ;;  %v1178_v31 = vpack.c.bf16 %v1158_v59, %v1158_v59  ;;  %v2050_v19 = vld [vmem:[%s3023_s0 + $0x1a0] sm:$0xff] }
 0x107   :  { %v849_v46 = vadd.f32 %v810_v32, %v614_v49  ;;  %v2814_v38 = vadd.f32 %v947_v35, %v848_v22  ;;  %v481_v35 = vpop.f32.mrf.mxu1 }
 0x108   :  { %v1175_v40 = vpack.c.bf16 %v1155_v26, %v1155_v26  ;;  %v482_v39 = vadd.f32 %v481_v35, %v2790_v34 }
 0x10a   :  { %v1213_v3 = vunpack.c.l.b16 %v1175_v40 }
 0x10c   :  { %v577_v42 = vpop.f32.mrf.mxu2  ;;  %v1227_v1 = vpack.c.b16 %v1213_v3, %v1212_v13  ;;  %v1367_v16 = vpack.c.b16 %v1214_v5, %v1213_v3 }
 0x10d   :  { %v615_v43 = vadd.f32 %v577_v42, %v472_v41 }
 0x10e   :  { %v812_v45 = vpop.f32.mrf.mxu3  ;;  %v950_v51 = vpop.f32.mrf.mxu0 }
 0x10f   :  { %v850_v52 = vadd.f32 %v812_v45, %v615_v43  ;;  %v2821_v53 = vadd.f32 %v950_v51, %v849_v46  ;;  %v1216_v46 = vunpack.c.l.b16 %v1178_v31 }
 0x111   :  { %1308 = vmatmul.bf16.gmra.mxu2 %v1226_v50  ;;  %1567 = vmatmul.bf16.gmra.mxu0 %v1226_v50  ;;  %v2049_v50 = vld [vmem:[%s3023_s0 + $0x198] sm:$0xff] }
 0x112   :  { %v1159_v34 = vmax.f32 %v2049_v50, 0.0 }
 0x113   :  { %1448 = vmatmul.bf16.gmra.mxu3 %v1366_v29 }
 0x114   :  { %v580_v56 = vpop.f32.mrf.mxu2 }
 0x115   :  { %v616_v58 = vadd.f32 %v580_v56, %v2756_v44  ;;  %v2047_v44 = vld [vmem:[%s3023_s0 + $0x188] sm:$0xff]  ;;  %v1179_v56 = vpack.c.bf16 %v1159_v34, %v1159_v34 }
 0x116   :  { %v815_v11 = vpop.f32.mrf.mxu3  ;;  %v952_v62 = vpop.f32.mrf.mxu0  ;;  %v1157_v48 = vmax.f32 %v2047_v44, 0.0 }
 0x117   :  { %v851_v14 = vadd.f32 %v815_v11, %v616_v58  ;;  %v2827_v0 = vadd.f32 %v952_v62, %v850_v52  ;;  %v1160_v52 = vmax.f32 %v2050_v19, 0.0  ;;  %v1217_v63 = vunpack.c.l.b16 %v1179_v56 }
 0x118   :  { %v1177_v27 = vpack.c.bf16 %v1157_v48, %v1157_v48 }
 0x119   :  { %v1180_v11 = vpack.c.bf16 %v1160_v52, %v1160_v52 }
 0x11a   :  { %v1215_v36 = vunpack.c.l.b16 %v1177_v27 }
 0x11c   :  { %v582_v8 = vpop.f32.mrf.mxu2  ;;  %v1228_v42 = vpack.c.b16 %v1215_v36, %v1214_v5  ;;  %v1368_v45 = vpack.c.b16 %v1216_v46, %v1215_v36 }
 0x11d   :  { %v617_v12 = vadd.f32 %v582_v8, %v477_v7  ;;  %v1229_v8 = vpack.c.b16 %v1217_v63, %v1216_v46 }
 0x11e   :  { %v817_v15 = vpop.f32.mrf.mxu3  ;;  %v955_v6 = vpop.f32.mrf.mxu0 }
 0x11f   :  { %v852_v18 = vadd.f32 %v817_v15, %v617_v12  ;;  %v2834_v20 = vadd.f32 %v955_v6, %v851_v14  ;;  %v1218_v14 = vunpack.c.l.b16 %v1180_v11 }
 0x121   :  { %1313 = vmatmul.bf16.gmra.mxu2 %v1227_v1  ;;  %1572 = vmatmul.bf16.gmra.mxu0 %v1227_v1  ;;  %v1369_v15 = vpack.c.b16 %v1218_v14, %v1217_v63 }
 0x123   :  { %1453 = vmatmul.bf16.gmra.mxu3 %v1367_v16  ;;  %v2052_v16 = vld [vmem:[%s3023_s0 + $0x1b0] sm:$0xff] }
 0x124   :  { %v585_v55 = vpop.f32.mrf.mxu2 }
 0x125   :  { %v618_v22 = vadd.f32 %v585_v55, %v2787_v17 }
 0x126   :  { %v820_v24 = vpop.f32.mrf.mxu3  ;;  %v957_v2 = vpop.f32.mrf.mxu0 }
 0x127   :  { %v853_v49 = vadd.f32 %v820_v24, %v618_v22  ;;  %v2840_v32 = vadd.f32 %v957_v2, %v852_v18 }
 0x12c   :  { %v587_v13 = vpop.f32.mrf.mxu2 }
 0x12d   :  { %v619_v41 = vadd.f32 %v587_v13, %v482_v39 }
 0x12e   :  { %v822_v17 = vpop.f32.mrf.mxu3  ;;  %v960_v43 = vpop.f32.mrf.mxu0 }
 0x12f   :  { %v854_v51 = vadd.f32 %v822_v17, %v619_v41  ;;  %v2849_v29 = vadd.f32 %v960_v43, %v853_v49  ;;  %v2054_v17 = vld [vmem:[%s3023_s0 + $0x1c0] sm:$0xff]  ;;  %v1064_v43 = vpop.f32.mrf.mxu1 }
 0x131   :  { %1318 = vmatmul.bf16.gmra.mxu2 %v1228_v42  ;;  %1577 = vmatmul.bf16.gmra.mxu0 %v1228_v42 }
 0x133   :  { %1458 = vmatmul.bf16.gmra.mxu3 %v1368_v45 }
 0x134   :  { %v590_v54 = vpop.f32.mrf.mxu2 }
 0x135   :  { %v620_v26 = vadd.f32 %v590_v54, %v2688_v30  ;;  %v2051_v30 = vld [vmem:[%s3023_s0 + $0x1a8] sm:$0xff] }
 0x136   :  { %v825_v28 = vpop.f32.mrf.mxu3  ;;  %v962_v58 = vpop.f32.mrf.mxu0  ;;  %v1161_v44 = vmax.f32 %v2051_v30, 0.0 }
 0x137   :  { %v855_v40 = vadd.f32 %v825_v28, %v620_v26  ;;  %v2855_v62 = vadd.f32 %v962_v58, %v854_v51  ;;  %v1066_v58 = vpop.f32.mrf.mxu1 }
 0x138   :  { %v1181_v59 = vpack.c.bf16 %v1161_v44, %v1161_v44 }
 0x13a   :  { %v1219_v2 = vunpack.c.l.b16 %v1181_v59 }
 0x13c   :  { %v592_v3 = vpop.f32.mrf.mxu2  ;;  %v1230_v36 = vpack.c.b16 %v1219_v2, %v1218_v14 }
 0x13d   :  { %v621_v5 = vadd.f32 %v592_v3, %v2695_v47  ;;  %v1162_v47 = vmax.f32 %v2052_v16, 0.0 }
 0x13e   :  { %v827_v7 = vpop.f32.mrf.mxu3  ;;  %v965_v12 = vpop.f32.mrf.mxu0 }
 0x13f   :  { %v856_v1 = vadd.f32 %v827_v7, %v621_v5  ;;  %v2861_v6 = vadd.f32 %v965_v12, %v855_v40  ;;  %v1182_v22 = vpack.c.bf16 %v1162_v47, %v1162_v47  ;;  %v2056_v12 = vld [vmem:[%s3023_s0 + $0x1d0] sm:$0xff]  ;;  %v1069_v47 = vpop.f32.mrf.mxu1 }
 0x141   :  { %1323 = vmatmul.bf16.gmra.mxu2 %v1229_v8  ;;  %1582 = vmatmul.bf16.gmra.mxu0 %v1229_v8  ;;  %v1220_v31 = vunpack.c.l.b16 %v1182_v22 }
 0x143   :  { %1463 = vmatmul.bf16.gmra.mxu3 %v1369_v15  ;;  %v1370_v39 = vpack.c.b16 %v1220_v31, %v1219_v2 }
 0x144   :  { %v595_v18 = vpop.f32.mrf.mxu2 }
 0x145   :  { %v622_v21 = vadd.f32 %v595_v18, %v2709_v61  ;;  %v2053_v61 = vld [vmem:[%s3023_s0 + $0x1b8] sm:$0xff] }
 0x146   :  { %v830_v48 = vpop.f32.mrf.mxu3  ;;  %v967_v55 = vpop.f32.mrf.mxu0  ;;  %v1163_v42 = vmax.f32 %v2053_v61, 0.0 }
 0x147   :  { %v857_v24 = vadd.f32 %v830_v48, %v622_v21  ;;  %v2867_v27 = vadd.f32 %v967_v55, %v856_v1 }
 0x148   :  { %v1183_v19 = vpack.c.bf16 %v1163_v42, %v1163_v42 }
 0x14a   :  { %v1221_v28 = vunpack.c.l.b16 %v1183_v19 }
 0x14c   :  { %v597_v49 = vpop.f32.mrf.mxu2  ;;  %v1231_v14 = vpack.c.b16 %v1221_v28, %v1220_v31 }
 0x14d   :  { %v623_v33 = vadd.f32 %v597_v49, %v2716_v9  ;;  %v1164_v9 = vmax.f32 %v2054_v17, 0.0 }
 0x14e   :  { %v832_v35 = vpop.f32.mrf.mxu3  ;;  %v970_v46 = vpop.f32.mrf.mxu0 }
 0x14f   :  { %v858_v13 = vadd.f32 %v832_v35, %v623_v33  ;;  %v2873_v41 = vadd.f32 %v970_v46, %v857_v24  ;;  %v1184_v52 = vpack.c.bf16 %v1164_v9, %v1164_v9 }
 0x151   :  { %1328 = vmatmul.bf16.gmra.mxu2 %v1230_v36  ;;  %1587 = vmatmul.bf16.gmra.mxu0 %v1230_v36  ;;  %v1222_v56 = vunpack.c.l.b16 %v1184_v52 }
 0x153   :  { %1468 = vmatmul.bf16.gmra.mxu3 %v1370_v39  ;;  %v1371_v5 = vpack.c.b16 %v1222_v56, %v1221_v28  ;;  %v1071_v39 = vpop.f32.mrf.mxu1 }
 0x154   :  { %v600_v45 = vpop.f32.mrf.mxu2 }
 0x155   :  { %v624_v50 = vadd.f32 %v600_v45, %v2730_v25  ;;  %v2055_v25 = vld [vmem:[%s3023_s0 + $0x1c8] sm:$0xff] }
 0x156   :  { %v835_v51 = vpop.f32.mrf.mxu3  ;;  %v972_v34 = vpop.f32.mrf.mxu0  ;;  %v1165_v15 = vmax.f32 %v2055_v25, 0.0 }
 0x157   :  { %v859_v54 = vadd.f32 %v835_v51, %v624_v50  ;;  %v2879_v26 = vadd.f32 %v972_v34, %v858_v13  ;;  %v1109_v51 = vadd.f32 %v1064_v43, %v2796_v60 }
 0x158   :  { %v1185_v44 = vpack.c.bf16 %v1165_v15, %v1165_v15 }
 0x15a   :  { %v1223_v55 = vunpack.c.l.b16 %v1185_v44 }
 0x15b   :  { %v1074_v50 = vpop.f32.mrf.mxu1 }
 0x15c   :  { %v602_v11 = vpop.f32.mrf.mxu2  ;;  %v1232_v49 = vpack.c.b16 %v1223_v55, %v1222_v56  ;;  %v1110_v56 = vadd.f32 %v1066_v58, %v2802_v10  ;;  %v1111_v10 = vadd.f32 %v1069_v47, %v2808_v23 }
 0x15d   :  { %v625_v40 = vadd.f32 %v602_v11, %v2742_v37  ;;  %v1166_v37 = vmax.f32 %v2056_v12, 0.0 }
 0x15e   :  { %v837_v63 = vpop.f32.mrf.mxu3  ;;  %v975_v3 = vpop.f32.mrf.mxu0 }
 0x15f   :  { %v860_v7 = vadd.f32 %v837_v63, %v625_v40  ;;  %v2885_v8 = vadd.f32 %v975_v3, %v859_v54  ;;  %v1186_v21 = vpack.c.bf16 %v1166_v37, %v1166_v37 }
 0x161   :  { %1333 = vmatmul.bf16.gmra.mxu2 %v1231_v14  ;;  %1592 = vmatmul.bf16.gmra.mxu0 %v1231_v14  ;;  %v1363_v22 = vunpack.c.l.b16 %v1186_v21  ;;  %v2906_v14 = vld [vmem:[%s3025_s2] ss:$0 sm:$0xff] }
 0x163   :  { %1473 = vmatmul.bf16.gmra.mxu3 %v1371_v5  ;;  %v1372_v35 = vpack.c.b16 %v1363_v22, %v1223_v55  ;;  %v1076_v3 = vpop.f32.mrf.mxu1 }
 0x164   :  { %v605_v30 = vpop.f32.mrf.mxu2 }
 0x165   :  { %v626_v1 = vadd.f32 %v605_v30, %v2759_v57  ;;  %v2057_v57 = vld [vmem:[%s3023_s0 + $0x1d8] sm:$0xff] }
 0x166   :  { %v840_v16 = vpop.f32.mrf.mxu3  ;;  %v977_v18 = vpop.f32.mrf.mxu0  ;;  %v1167_v61 = vmax.f32 %v2057_v57, 0.0 }
 0x167   :  { %v861_v48 = vadd.f32 %v840_v16, %v626_v1  ;;  %v2891_v59 = vadd.f32 %v977_v18, %v860_v7 }
 0x168   :  { %v1187_v42 = vpack.c.bf16 %v1167_v61, %v1167_v61 }
 0x16a   :  { %v1503_v45 = vunpack.c.l.b16 %v1187_v42 }
 0x16b   :  { %v1079_v18 = vpop.f32.mrf.mxu1 }
 0x16c   :  { %v607_v24 = vpop.f32.mrf.mxu2  ;;  %v1504_v54 = vpack.c.b16 %v1503_v45, %v1363_v22  ;;  %v1114_v45 = vadd.f32 %v1076_v3, %v2827_v0 }
 0x16d   :  { %v627_v2 = vadd.f32 %v607_v24, %v2767_v4 }
 0x16e   :  { %v842_v31 = vpop.f32.mrf.mxu3  ;;  %v980_v33 = vpop.f32.mrf.mxu0 }
 0x16f   :  { %v862_v36 = vadd.f32 %v842_v31, %v627_v2  ;;  %v2897_v46 = vadd.f32 %v980_v33, %v861_v48  ;;  %v1112_v48 = vadd.f32 %v1071_v39, %v2814_v38 }
 0x171   :  { %1338 = vmatmul.bf16.gmra.mxu2 %v1232_v49  ;;  %1597 = vmatmul.bf16.gmra.mxu0 %v1232_v49 }
 0x173   :  { %1478 = vmatmul.bf16.gmra.mxu3 %v1372_v35  ;;  %v1081_v35 = vpop.f32.mrf.mxu1 }
 0x174   :  { %v1299_v13 = vpop.f32.mrf.mxu2 }
 0x175   :  { %v1344_v34 = vadd.f32 %v1299_v13, %v1109_v51 }
 0x176   :  { %v1439_v17 = vpop.f32.mrf.mxu3  ;;  %v982_v4 = vpop.f32.mrf.mxu0 }
 0x177   :  { %v2899_v9 = vadd.f32 %v982_v4, %v862_v36  ;;  %v1484_v11 = vadd.f32 %v1439_v17, %v1344_v34  ;;  %v1113_v36 = vadd.f32 %v1074_v50, %v2821_v53 }
 0x17b   :  { %v1084_v34 = vpop.f32.mrf.mxu1 }
 0x17c   :  { %v1301_v19 = vpop.f32.mrf.mxu2 }
 0x17d   :  { %v1345_v40 = vadd.f32 %v1301_v19, %v1110_v56 }
 0x17e   :  { %v1441_v52 = vpop.f32.mrf.mxu3  ;;  %v1563_v28 = vpop.f32.mrf.mxu0 }
 0x17f   :  { %v1608_v63 = vadd.f32 %v1563_v28, %v1484_v11  ;;  %v1485_v25 = vadd.f32 %v1441_v52, %v1345_v40 }
 0x181   :  { %1602 = vmatmul.bf16.gmra.mxu0 %v1504_v54  ;;  %v1630_v7 = vadd.f32 %v2906_v14, %v1608_v63  ;;  %v1115_v63 = vadd.f32 %v1079_v18, %v2834_v20 }
 0x183   :  { %v1648_v58 = vmax.f32 %v1630_v7, 0.0  ;;  %v1086_v0 = vpop.f32.mrf.mxu1 }
 0x184   :  { %v1304_v5 = vpop.f32.mrf.mxu2 }
 0x185   :  { %v1346_v1 = vadd.f32 %v1304_v5, %v1111_v10 }
 0x186   :  { %v1444_v60 = vpop.f32.mrf.mxu3  ;;  %v1565_v43 = vpop.f32.mrf.mxu0 }
 0x187   :  { %v1609_v12 = vadd.f32 %v1565_v43, %v1485_v25  ;;  %v1486_v55 = vadd.f32 %v1444_v60, %v1346_v1 }
 0x189   :  { %v1631_v15 = vadd.f32 %v2906_v14, %v1609_v12 }
 0x18b   :  { %v1649_v37 = vmax.f32 %v1631_v15, 0.0  ;;  %v1116_v15 = vadd.f32 %v1081_v35, %v2840_v32 }
 0x18c   :  { %v1306_v30 = vpop.f32.mrf.mxu2 }
 0x18d   :  { %v1666_v16 = vpack.c.bf16 %v1649_v37, %v1648_v58  ;;  %v1347_v22 = vadd.f32 %v1306_v30, %v1112_v48 }
 0x18e   :  { %v1446_v44 = vpop.f32.mrf.mxu3  ;;  %v1568_v21 = vpop.f32.mrf.mxu0 }
 0x18f   :  { %2162 = vmatmul.msk.bf16.vlgmr.msra.gmra.mxu1 %vm1695_vm0, %v1666_v16  ;;  %v1610_v24 = vadd.f32 %v1568_v21, %v1486_v55  ;;  %v1487_v31 = vadd.f32 %v1446_v44, %v1347_v22  ;;  %v1089_v44 = vpop.f32.mrf.mxu1  ;;  %v1117_v55 = vadd.f32 %v1084_v34, %v2849_v29 }
 0x191   :  { %v1632_v47 = vadd.f32 %v2906_v14, %v1610_v24 }
 0x193   :  { %v1650_v61 = vmax.f32 %v1632_v47, 0.0  ;;  %v1118_v47 = vadd.f32 %v1086_v0, %v2855_v62 }
 0x194   :  { %v1309_v2 = vpop.f32.mrf.mxu2 }
 0x195   :  { %v1348_v39 = vadd.f32 %v1309_v2, %v1113_v36 }
 0x196   :  { %v1449_v49 = vpop.f32.mrf.mxu3  ;;  %v1570_v23 = vpop.f32.mrf.mxu0 }
 0x197   :  { %v1611_v33 = vadd.f32 %v1570_v23, %v1487_v31  ;;  %v1488_v51 = vadd.f32 %v1449_v49, %v1348_v39 }
 0x199   :  { %v1633_v57 = vadd.f32 %v2906_v14, %v1611_v33  ;;  %v1091_v33 = vpop.f32.mrf.mxu1 }
 0x19b   :  { %v1651_v13 = vmax.f32 %v1633_v57, 0.0 }
 0x19c   :  { %v1311_v38 = vpop.f32.mrf.mxu2 }
 0x19d   :  { %v1667_v17 = vpack.c.bf16 %v1651_v13, %v1650_v61  ;;  %v1349_v19 = vadd.f32 %v1311_v38, %v1114_v45  ;;  %v1119_v45 = vadd.f32 %v1089_v44, %v2861_v6 }
 0x19e   :  { %v1451_v42 = vpop.f32.mrf.mxu3  ;;  %v1573_v4 = vpop.f32.mrf.mxu0 }
 0x19f   :  { %2163 = vmatmul.msk.bf16.gmra.mxu1 %vm1695_vm0, %v1667_v17  ;;  %v1612_v52 = vadd.f32 %v1573_v4, %v1488_v51  ;;  %v1489_v28 = vadd.f32 %v1451_v42, %v1349_v19 }
 0x1a1   :  { %v1634_v53 = vadd.f32 %v2906_v14, %v1612_v52  ;;  %v1094_v4 = vpop.f32.mrf.mxu1 }
 0x1a3   :  { %v1652_v5 = vmax.f32 %v1634_v53, 0.0 }
 0x1a4   :  { %v1314_v54 = vpop.f32.mrf.mxu2 }
 0x1a5   :  { %v1350_v60 = vadd.f32 %v1314_v54, %v1115_v63 }
 0x1a6   :  { %v1454_v56 = vpop.f32.mrf.mxu3  ;;  %v1575_v11 = vpop.f32.mrf.mxu0 }
 0x1a7   :  { %v1613_v50 = vadd.f32 %v1575_v11, %v1489_v28  ;;  %v1490_v10 = vadd.f32 %v1454_v56, %v1350_v60  ;;  %v1120_v56 = vadd.f32 %v1091_v33, %v2867_v27 }
 0x1a9   :  { %v1635_v40 = vadd.f32 %v2906_v14, %v1613_v50 }
 0x1ab   :  { %v1653_v25 = vmax.f32 %v1635_v40, 0.0  ;;  %v1096_v40 = vpop.f32.mrf.mxu1 }
 0x1ac   :  { %v1316_v3 = vpop.f32.mrf.mxu2 }
 0x1ad   :  { %v1668_v43 = vpack.c.bf16 %v1653_v25, %v1652_v5  ;;  %v1351_v58 = vadd.f32 %v1316_v3, %v1116_v15 }
 0x1ae   :  { %v1456_v7 = vpop.f32.mrf.mxu3  ;;  %v1578_v12 = vpop.f32.mrf.mxu0 }
 0x1af   :  { %2164 = vmatmul.msk.bf16.gmra.mxu1 %vm1695_vm0, %v1668_v43  ;;  %v1614_v37 = vadd.f32 %v1578_v12, %v1490_v10  ;;  %v1491_v1 = vadd.f32 %v1456_v7, %v1351_v58  ;;  %v1121_v43 = vadd.f32 %v1094_v4, %v2873_v41 }
 0x1b1   :  { %v1636_v18 = vadd.f32 %v2906_v14, %v1614_v37 }
 0x1b3   :  { %v1654_v22 = vmax.f32 %v1636_v18, 0.0  ;;  %v1099_v37 = vpop.f32.mrf.mxu1 }
 0x1b4   :  { %v1319_v30 = vpop.f32.mrf.mxu2 }
 0x1b5   :  { %v1352_v2 = vadd.f32 %v1319_v30, %v1117_v55 }
 0x1b6   :  { %v1459_v16 = vpop.f32.mrf.mxu3  ;;  %v1580_v20 = vpop.f32.mrf.mxu0 }
 0x1b7   :  { %v1615_v21 = vadd.f32 %v1580_v20, %v1491_v1  ;;  %v1492_v35 = vadd.f32 %v1459_v16, %v1352_v2  ;;  %v1122_v1 = vadd.f32 %v1096_v40, %v2879_v26  ;;  %v1123_v2 = vadd.f32 %v1099_v37, %v2885_v8 }
 0x1b9   :  { %v1637_v48 = vadd.f32 %v2906_v14, %v1615_v21 }
 0x1bb   :  { %v1655_v24 = vmax.f32 %v1637_v48, 0.0 }
 0x1bc   :  { %v1321_v32 = vpop.f32.mrf.mxu2 }
 0x1bd   :  { %v1669_v31 = vpack.c.bf16 %v1655_v24, %v1654_v22  ;;  %v1353_v57 = vadd.f32 %v1321_v32, %v1118_v47  ;;  %v1101_v24 = vpop.f32.mrf.mxu1 }
 0x1be   :  { %v1461_v49 = vpop.f32.mrf.mxu3  ;;  %v1583_v23 = vpop.f32.mrf.mxu0 }
 0x1bf   :  { %2165 = vmatmul.msk.bf16.gmra.mxu1 %vm1695_vm0, %v1669_v31  ;;  %v1616_v36 = vadd.f32 %v1583_v23, %v1492_v35  ;;  %v1493_v13 = vadd.f32 %v1461_v49, %v1353_v57  ;;  %v1124_v35 = vadd.f32 %v1101_v24, %v2891_v59 }
 0x1c1   :  { %v1638_v29 = vadd.f32 %v2906_v14, %v1616_v36 }
 0x1c3   :  { %v1656_v51 = vmax.f32 %v1638_v29, 0.0 }
 0x1c4   :  { %v1324_v61 = vpop.f32.mrf.mxu2 }
 0x1c5   :  { %v1354_v34 = vadd.f32 %v1324_v61, %v1119_v45 }
 0x1c6   :  { %v1464_v38 = vpop.f32.mrf.mxu3  ;;  %v1585_v39 = vpop.f32.mrf.mxu0 }
 0x1c7   :  { %v1617_v17 = vadd.f32 %v1585_v39, %v1493_v13  ;;  %v1494_v11 = vadd.f32 %v1464_v38, %v1354_v34  ;;  %v1104_v13 = vpop.f32.mrf.mxu1 }
 0x1c9   :  { %v1639_v42 = vadd.f32 %v2906_v14, %v1617_v17 }
 0x1cb   :  { %v1657_v62 = vmax.f32 %v1639_v42, 0.0 }
 0x1cc   :  { %v1326_v19 = vpop.f32.mrf.mxu2 }
 0x1cd   :  { %v1670_v52 = vpack.c.bf16 %v1657_v62, %v1656_v51  ;;  %v1355_v53 = vadd.f32 %v1326_v19, %v1120_v56  ;;  %v1125_v51 = vadd.f32 %v1104_v13, %v2897_v46 }
 0x1ce   :  { %v1466_v54 = vpop.f32.mrf.mxu3  ;;  %v1588_v28 = vpop.f32.mrf.mxu0 }
 0x1cf   :  { %2166 = vmatmul.msk.bf16.gmra.mxu1 %vm1695_vm0, %v1670_v52  ;;  %v1618_v50 = vadd.f32 %v1588_v28, %v1494_v11  ;;  %v1495_v5 = vadd.f32 %v1466_v54, %v1355_v53  ;;  %v1106_v19 = vpop.f32.mrf.mxu1 }
 0x1d0   :  { %v1126_v56 = vadd.f32 %v1106_v19, %v2899_v9 }
 0x1d1   :  { %v1640_v6 = vadd.f32 %v2906_v14, %v1618_v50 }
 0x1d3   :  { %v1658_v7 = vmax.f32 %v1640_v6, 0.0  ;;  %v2953_v6 = vld [vmem:[%s3027_s4] ss:$0 sm:$0xff] }
 0x1d4   :  { %v1329_v63 = vpop.f32.mrf.mxu2 }
 0x1d5   :  { %v1356_v15 = vadd.f32 %v1329_v63, %v1121_v43 }
 0x1d6   :  { %v1469_v25 = vpop.f32.mrf.mxu3  ;;  %v1590_v0 = vpop.f32.mrf.mxu0 }
 0x1d7   :  { %v1619_v3 = vadd.f32 %v1590_v0, %v1495_v5  ;;  %v1496_v16 = vadd.f32 %v1469_v25, %v1356_v15 }
 0x1d9   :  { %v1641_v60 = vadd.f32 %v2906_v14, %v1619_v3 }
 0x1db   :  { %v1659_v12 = vmax.f32 %v1641_v60, 0.0 }
 0x1dc   :  { %v1331_v27 = vpop.f32.mrf.mxu2 }
 0x1dd   :  { %v1671_v10 = vpack.c.bf16 %v1659_v12, %v1658_v7  ;;  %v1357_v44 = vadd.f32 %v1331_v27, %v1122_v1  ;;  %v2266_v12 = vld [vmem:[%s3023_s0 + $0xa8] sm:$0xff]  ;;  %v2268_v1 = vld [vmem:[%s3023_s0 + $0xb8] sm:$0xff] }
 0x1de   :  { %v1471_v58 = vpop.f32.mrf.mxu3  ;;  %v1593_v30 = vpop.f32.mrf.mxu0 }
 0x1df   :  { %2167 = vmatmul.msk.bf16.gmra.mxu1 %vm1695_vm0, %v1671_v10  ;;  %v1620_v20 = vadd.f32 %v1593_v30, %v1496_v16  ;;  %v1497_v21 = vadd.f32 %v1471_v58, %v1357_v44  ;;  %v2267_v10 = vld [vmem:[%s3023_s0 + $0xb0] sm:$0xff] }
 0x1e1   :  { %v1642_v41 = vadd.f32 %v2906_v14, %v1620_v20 }
 0x1e3   :  { %v1660_v31 = vmax.f32 %v1642_v41, 0.0  ;;  %v2270_v41 = vld [vmem:[%s3023_s0 + $0xc8] sm:$0xff] }
 0x1e4   :  { %v1334_v18 = vpop.f32.mrf.mxu2 }
 0x1e5   :  { %v1358_v23 = vadd.f32 %v1334_v18, %v1123_v2  ;;  %v2269_v18 = vld [vmem:[%s3023_s0 + $0xc0] sm:$0xff]  ;;  %v2271_v2 = vld [vmem:[%s3023_s0 + $0xd0] sm:$0xff] }
 0x1e6   :  { %v1474_v48 = vpop.f32.mrf.mxu3  ;;  %v1595_v55 = vpop.f32.mrf.mxu0 }
 0x1e7   :  { %v1621_v22 = vadd.f32 %v1595_v55, %v1497_v21  ;;  %v1498_v36 = vadd.f32 %v1474_v48, %v1358_v23  ;;  %v2272_v23 = vld [vmem:[%s3023_s0 + $0xd8] sm:$0xff] }
 0x1e9   :  { %v1643_v32 = vadd.f32 %v2906_v14, %v1621_v22 }
 0x1eb   :  { %v1661_v49 = vmax.f32 %v1643_v32, 0.0 }
 0x1ec   :  { %v1336_v26 = vpop.f32.mrf.mxu2 }
 0x1ed   :  { %v1672_v47 = vpack.c.bf16 %v1661_v49, %v1660_v31  ;;  %v1359_v61 = vadd.f32 %v1336_v26, %v1124_v35 }
 0x1ee   :  { %v1598_v33 = vpop.f32.mrf.mxu0  ;;  %v1476_v57 = vpop.f32.mrf.mxu3 }
 0x1ef   :  { %2168 = vmatmul.msk.bf16.gmra.mxu1 %vm1695_vm0, %v1672_v47  ;;  %v1622_v38 = vadd.f32 %v1598_v33, %v1498_v36  ;;  %v1499_v29 = vadd.f32 %v1476_v57, %v1359_v61  ;;  %v2273_v57 = vld [vmem:[%s3023_s0 + $0xe0] sm:$0xff] }
 0x1f1   :  { %v1644_v8 = vadd.f32 %v2906_v14, %v1622_v38 }
 0x1f3   :  { %v1662_v62 = vmax.f32 %v1644_v8, 0.0 }
 0x1f4   :  { %v1339_v39 = vpop.f32.mrf.mxu2 }
 0x1f5   :  { %v1360_v34 = vadd.f32 %v1339_v39, %v1125_v51 }
 0x1f6   :  { %v1600_v17 = vpop.f32.mrf.mxu0  ;;  %v1479_v45 = vpop.f32.mrf.mxu3 }
 0x1f7   :  { %v1623_v42 = vadd.f32 %v1600_v17, %v1499_v29  ;;  %v1500_v11 = vadd.f32 %v1479_v45, %v1360_v34  ;;  %v2274_v29 = vld [vmem:[%s3023_s0 + $0xf8] sm:$0xff] }
 0x1f9   :  { %v1645_v4 = vadd.f32 %v2906_v14, %v1623_v42 }
 0x1fb   :  { %v1663_v59 = vmax.f32 %v1645_v4, 0.0  ;;  %v2275_v4 = vld [vmem:[%s3023_s0 + $0x100] sm:$0xff] }
 0x1fc   :  { %v1341_v54 = vpop.f32.mrf.mxu2 }
 0x1fd   :  { %v1673_v52 = vpack.c.bf16 %v1663_v59, %v1662_v62  ;;  %v1361_v53 = vadd.f32 %v1341_v54, %v1126_v56  ;;  %v2276_v59 = vld [vmem:[%s3023_s0 + $0x108] sm:$0xff]  ;;  %v2277_v54 = vld [vmem:[%s3023_s0 + $0x110] sm:$0xff] }
 0x1fe   :  { %v1603_v28 = vpop.f32.mrf.mxu0  ;;  %v1481_v40 = vpop.f32.mrf.mxu3 }
 0x1ff   :  { %2169 = vmatmul.msk.bf16.gmra.mxu1 %vm1695_vm0, %v1673_v52  ;;  %v1624_v50 = vadd.f32 %v1603_v28, %v1500_v11  ;;  %v1501_v63 = vadd.f32 %v1481_v40, %v1361_v53  ;;  %v2278_v53 = vld [vmem:[%s3023_s0 + $0x118] sm:$0xff] }
 0x201   :  { %v1646_v25 = vadd.f32 %v2906_v14, %v1624_v50 }
 0x203   :  { %v1664_v3 = vmax.f32 %v1646_v25, 0.0 }
 0x206   :  { %v1605_v5 = vpop.f32.mrf.mxu0 }
 0x207   :  { %v1625_v46 = vadd.f32 %v1605_v5, %v1501_v63  ;;  %v2279_v5 = vld [vmem:[%s3023_s0 + $0x120] sm:$0xff] }
 0x209   :  { %v1647_v0 = vadd.f32 %v2906_v14, %v1625_v46 }
 0x20b   :  { %v1665_v9 = vmax.f32 %v1647_v0, 0.0 }
 0x20c   :  { %v1732_v60 = vpop.f32.mrf.mxu1 }
 0x20d   :  { %v1674_v43 = vpack.c.bf16 %v1665_v9, %v1664_v3  ;;  %v1733_v7 = vadd.f32 %v2953_v6, %v1732_v60  ;;  %v2280_v3 = vld [vmem:[%s3023_s0 + $0x128] sm:$0xff] }
 0x20f   :  { %v1775_v27 = vadd.f32 %v2266_v12, %v1733_v7  ;;  %2170 = vmatmul.msk.bf16.gmra.mxu1 %vm1695_vm0, %v1674_v43  ;;  %v2281_v7 = vld [vmem:[%s3023_s0 + $0x130] sm:$0xff] }
 0x211   :  { %1783 = vst [vmem:[#allocation2] sm:$0xff] %v1775_v27 }
 0x214   :  { %v1734_v14 = vpop.f32.mrf.mxu1 }
 0x215   :  { %v1735_v15 = vadd.f32 %v2953_v6, %v1734_v14 }
 0x217   :  { %v1776_v58 = vadd.f32 %v2267_v10, %v1735_v15 }
 0x219   :  { %1784 = vst [vmem:[#allocation2 + $0x8] sm:$0xff] %v1776_v58 }
 0x21c   :  { %v1737_v37 = vpop.f32.mrf.mxu1 }
 0x21d   :  { %v1738_v30 = vadd.f32 %v2953_v6, %v1737_v37 }
 0x21f   :  { %v1777_v16 = vadd.f32 %v2268_v1, %v1738_v30 }
 0x221   :  { %1785 = vst [vmem:[#allocation2 + $0x10] sm:$0xff] %v1777_v16 }
 0x224   :  { %v1739_v44 = vpop.f32.mrf.mxu1 }
 0x225   :  { %v1740_v20 = vadd.f32 %v2953_v6, %v1739_v44 }
 0x227   :  { %v1778_v21 = vadd.f32 %v2269_v18, %v1740_v20 }
 0x229   :  { %1786 = vst [vmem:[#allocation2 + $0x18] sm:$0xff] %v1778_v21 }
 0x22c   :  { %v1742_v48 = vpop.f32.mrf.mxu1 }
 0x22d   :  { %v1743_v55 = vadd.f32 %v2953_v6, %v1742_v48 }
 0x22f   :  { %v1779_v22 = vadd.f32 %v2270_v41, %v1743_v55 }
 0x231   :  { %1787 = vst [vmem:[#allocation2 + $0x20] sm:$0xff] %v1779_v22 }
 0x234   :  { %v1744_v24 = vpop.f32.mrf.mxu1 }
 0x235   :  { %v1745_v32 = vadd.f32 %v2953_v6, %v1744_v24 }
 0x237   :  { %v1780_v31 = vadd.f32 %v2271_v2, %v1745_v32 }
 0x239   :  { %1788 = vst [vmem:[#allocation2 + $0x28] sm:$0xff] %v1780_v31 }
 0x23c   :  { %v1747_v49 = vpop.f32.mrf.mxu1 }
 0x23d   :  { %v1748_v26 = vadd.f32 %v2953_v6, %v1747_v49 }
 0x23f   :  { %v1781_v47 = vadd.f32 %v2272_v23, %v1748_v26 }
 0x241   :  { %1789 = vst [vmem:[#allocation2 + $0x30] sm:$0xff] %v1781_v47 }
 0x244   :  { %v1749_v33 = vpop.f32.mrf.mxu1 }
 0x245   :  { %v1750_v35 = vadd.f32 %v2953_v6, %v1749_v33 }
 0x247   :  { %v1782_v36 = vadd.f32 %v2273_v57, %v1750_v35 }
 0x249   :  { %1790 = vst [vmem:[#allocation2 + $0x38] sm:$0xff] %v1782_v36 }
 0x24c   :  { %v1752_v61 = vpop.f32.mrf.mxu1 }
 0x254   :  { %v1753_v13 = vpop.f32.mrf.mxu1 }
 0x25c   :  { %v1755_v38 = vpop.f32.mrf.mxu1 }
 0x25d   :  { %v1756_v39 = vadd.f32 %v2953_v6, %v1755_v38 }
 0x25f   :  { %v1791_v17 = vadd.f32 %v2274_v29, %v1756_v39 }
 0x261   :  { %1800 = vst [vmem:[#allocation2 + $0x40] sm:$0xff] %v1791_v17 }
 0x264   :  { %v1757_v8 = vpop.f32.mrf.mxu1 }
 0x265   :  { %v1758_v42 = vadd.f32 %v2953_v6, %v1757_v8 }
 0x267   :  { %v1792_v45 = vadd.f32 %v2275_v4, %v1758_v42 }
 0x269   :  { %1801 = vst [vmem:[#allocation2 + $0x48] sm:$0xff] %v1792_v45 }
 0x26c   :  { %v1760_v51 = vpop.f32.mrf.mxu1 }
 0x26d   :  { %v1761_v62 = vadd.f32 %v2953_v6, %v1760_v51 }
 0x26f   :  { %v1793_v19 = vadd.f32 %v2276_v59, %v1761_v62 }
 0x271   :  { %1802 = vst [vmem:[#allocation2 + $0x50] sm:$0xff] %v1793_v19 }
 0x274   :  { %v1762_v34 = vpop.f32.mrf.mxu1 }
 0x275   :  { %v1763_v52 = vadd.f32 %v2953_v6, %v1762_v34 }
 0x277   :  { %v1794_v28 = vadd.f32 %v2277_v54, %v1763_v52 }
 0x279   :  { %1803 = vst [vmem:[#allocation2 + $0x58] sm:$0xff] %v1794_v28 }
 0x27c   :  { %v1765_v56 = vpop.f32.mrf.mxu1 }
 0x27d   :  { %v1766_v11 = vadd.f32 %v2953_v6, %v1765_v56 }
 0x27f   :  { %v1795_v50 = vadd.f32 %v2278_v53, %v1766_v11 }
 0x281   :  { %1804 = vst [vmem:[#allocation2 + $0x60] sm:$0xff] %v1795_v50 }
 0x284   :  { %v1767_v40 = vpop.f32.mrf.mxu1 }
 0x285   :  { %v1768_v63 = vadd.f32 %v2953_v6, %v1767_v40 }
 0x287   :  { %v1796_v25 = vadd.f32 %v2279_v5, %v1768_v63 }
 0x289   :  { %1805 = vst [vmem:[#allocation2 + $0x68] sm:$0xff] %v1796_v25 }
 0x28c   :  { %v1770_v46 = vpop.f32.mrf.mxu1 }
 0x28d   :  { %v1771_v0 = vadd.f32 %v2953_v6, %v1770_v46 }
 0x28f   :  { %v1797_v9 = vadd.f32 %v2280_v3, %v1771_v0 }
 0x291   :  { %1806 = vst [vmem:[#allocation2 + $0x70] sm:$0xff] %v1797_v9 }
 0x294   :  { %v1772_v60 = vpop.f32.mrf.mxu1 }
 0x295   :  { %v1773_v43 = vadd.f32 %v2953_v6, %v1772_v60 }
 0x297   :  { %v1798_v12 = vadd.f32 %v2281_v7, %v1773_v43 }
 0x299   :  { %1807 = vst [vmem:[#allocation2 + $0x78] sm:$0xff] %v1798_v12 }
 0x29a   :  { %1820 = dma.vmem_to_hbm [thread:$0]  %s1813_s1, 2048, %s1815_s14, [#allocation3], %s2309_s17, %s2309_s17, %s2310_s3  }
 0x29b   :  { %2306 = dma.done.wait [#allocation3], 2048  }
 0x29c   :  { %2307 = vsyncadd [#allocation3], 4294965248 }
 0x29d   :  { %1825 = vsyncpa [#allocation3], 1 }

</bundles_post_ra>
